<compile_context>
chip_gen: v7x
topology: tpu7x:2x2x1
jax: 0.10.0
libtpu: 0.0.40
codegen_flags: <defaults>
</compile_context>

<pallas_src>
import functools
import math

import jax
import jax.numpy as jnp
from jax import lax
from jax.experimental import pallas as pl
from jax.experimental.pallas import tpu as pltpu


# ----------------------------------------------------------------------------
# Fused kernel.  Grid = (batch_tiles [parallel], class_tiles [arbitrary]).
#   feature  = x_flat @ W_stem                         (stand-in for Resnet20)
#   normed_x = l2norm(feature, dim=1);  normed_w = l2norm(weight, dim=1)
#   prob     = (radius * normed_x) @ normed_w.T
# center_loss is recovered in the wrapper from prob (radius*cos) via a gather.
# ----------------------------------------------------------------------------
def _fused_kernel(xf_ref, ws_ref, wc_ref, feat_ref, logits_ref, nx_scratch,
                  *, radius):
    j = pl.program_id(1)

    @pl.when(j == 0)
    def _init():
        # Stem matmul: bf16 HBM operands, f32 MXU accumulation.
        feat = jnp.dot(xf_ref[...], ws_ref[...],
                       preferred_element_type=jnp.float32)
        feat_ref[...] = feat
        # F.normalize(feature, p=2, dim=1) with eps=1e-12, via rsqrt (EUP slot).
        # Fold the radius scale in once; keep the bf16 MXU operand resident.
        sumsq = jnp.sum(feat * feat, axis=1, keepdims=True)
        nx_scratch[...] = (
            radius * feat * lax.rsqrt(jnp.maximum(sumsq, 1e-24))
        ).astype(nx_scratch.dtype)

    # Normalize this class-center tile: f32 norm math on the bf16 stream.
    w = wc_ref[...].astype(jnp.float32)
    wsumsq = jnp.sum(w * w, axis=1, keepdims=True)
    nw = (w * lax.rsqrt(jnp.maximum(wsumsq, 1e-24))).astype(jnp.bfloat16)

    # prob tile = (radius * normed_x) @ normed_w_tile.T without materializing a
    # transpose: contract both operands on their last (feat) dim.
    logits_ref[...] = lax.dot_general(
        nx_scratch[...], nw,
        dimension_numbers=(((1,), (1,)), ((), ())),
        preferred_element_type=jnp.float32,
    )                                                    # [batch_tile, class_tile]


def _build_call(*, batch_tile, class_tile, CHW, D, num_class, n_bt, n_ct,
                radius, single_buffer_constants):
    const_mode = pl.Buffered(1) if single_buffer_constants else None

    def spec(shape, index_map, *, constant=False):
        # Blocks whose index_map is constant over the whole grid are fetched /
        # written exactly once; default double buffering only wastes VMEM there.
        if constant and const_mode is not None:
            return pl.BlockSpec(shape, index_map, pipeline_mode=const_mode)
        return pl.BlockSpec(shape, index_map)

    single_batch_tile = n_bt == 1
    kernel = functools.partial(_fused_kernel, radius=float(radius))
    B = n_bt * batch_tile

    return pl.pallas_call(
        kernel,
        out_shape=(
            jax.ShapeDtypeStruct((B, D), jnp.float32),          # feature
            jax.ShapeDtypeStruct((B, num_class), jnp.float32),  # prob / logits
        ),
        grid_spec=pltpu.PrefetchScalarGridSpec(
            num_scalar_prefetch=0,
            grid=(n_bt, n_ct),
            in_specs=[
                spec((batch_tile, CHW), lambda i, j: (i, 0),
                     constant=single_batch_tile),                    # x_flat (bf16)
                spec((CHW, D), lambda i, j: (0, 0), constant=True),  # stem W (bf16)
                spec((class_tile, D), lambda i, j: (j, 0)),          # centers (bf16)
            ],
            out_specs=(
                spec((batch_tile, D), lambda i, j: (i, 0),
                     constant=single_batch_tile),                    # feature
                spec((batch_tile, class_tile), lambda i, j: (i, j)), # prob tile
            ),
            scratch_shapes=[
                pltpu.VMEM((batch_tile, D), jnp.bfloat16),  # radius * normed feature
            ],
        ),
        compiler_params=pltpu.CompilerParams(
            dimension_semantics=("parallel", "arbitrary"),
            vmem_limit_bytes=48 * 1024 * 1024,
        ),
    )


# ----------------------------------------------------------------------------
# Full model forward (training=True): returns (prob, feature, center_loss)
# ----------------------------------------------------------------------------
def centerloss_model_forward(x_nchw, target, w_stem, w_center, radius,
                             *, class_tile=None, batch_tile=None):
    B = x_nchw.shape[0]
    x_flat = x_nchw.reshape(B, -1).astype(jnp.bfloat16)   # flatten NCHW, bf16 stream
    CHW = x_flat.shape[1]
    D = w_stem.shape[1]
    num_class = w_center.shape[0]

    # bf16 HBM streams; f32 norm math / accumulation stays inside the kernel.
    w_stem_bf = w_stem.astype(jnp.bfloat16)
    w_center_bf = w_center.astype(jnp.bfloat16)

    if class_tile is None:
        if num_class <= 2048:
            class_tile = num_class
        else:
            class_tile = next(
                (t for t in (2048, 1024, 512, 256, 128) if num_class % t == 0),
                num_class)
    assert num_class % class_tile == 0, "num_class must be divisible by class_tile"

    if batch_tile is None:
        if B <= 256:
            batch_tile = B
        else:
            batch_tile = next((t for t in (256, 128, 64, 32, 16, 8) if B % t == 0), B)
    assert B % batch_tile == 0, "batch must be divisible by batch_tile"

    n_bt, n_ct = B // batch_tile, num_class // class_tile
    common = dict(batch_tile=batch_tile, class_tile=class_tile, CHW=CHW, D=D,
                  num_class=num_class, n_bt=n_bt, n_ct=n_ct, radius=radius)
    args = (x_flat, w_stem_bf, w_center_bf)

    try:
        feature, prob = jax.block_until_ready(
            _build_call(single_buffer_constants=True, **common)(*args))
    except Exception:
        # Fallback if pl.Buffered(1) is rejected by this jax/Mosaic build.
        feature, prob = _build_call(single_buffer_constants=False, **common)(*args)

    # center_loss = -mean_i cos(feature_i, center[target_i]); prob already holds
    # radius * cos, so a B-element gather replaces the per-step mask/lane-reduce
    # that used to run inside the kernel.
    tgt = target.reshape(B, 1).astype(jnp.int32)
    center_loss = -jnp.mean(jnp.take_along_axis(prob, tgt, axis=1)) / float(radius)
    return prob, feature, center_loss


if __name__ == "__main__":
    # Small shapes consistent with the module (dim/num_class scaled down).
    B, C, H, W = 8, 4, 16, 16
    dim, num_class, radius = 128, 256, 10.0

    key = jax.random.PRNGKey(0)
    kx, kt, ks, kw = jax.random.split(key, 4)

    x = jax.random.normal(kx, (B, C, H, W), jnp.float32)
    target = jax.random.randint(kt, (B,), 0, num_class, jnp.int32)

    # Deterministic parameter init.
    w_stem = 0.01 * jax.random.normal(ks, (C * H * W, dim), jnp.float32)
    stdv = 1.0 / math.sqrt(dim)               # CenterLoss.reset_parameters
    w_center = jax.random.uniform(
        kw, (num_class, dim), jnp.float32, minval=-stdv, maxval=stdv
    )

    prob, feature, center_loss = centerloss_model_forward(
        x, target, w_stem, w_center, radius
    )
    jax.block_until_ready((prob, feature, center_loss))

    # Sanity checks against a pure-f32 JAX reference; tolerances account for
    # the intentional bf16 HBM streams / MXU operands in the kernel.
    feat_ref = x.reshape(B, -1) @ w_stem
    nx = feat_ref / jnp.maximum(
        jnp.linalg.norm(feat_ref, axis=1, keepdims=True), 1e-12
    )
    nw = w_center / jnp.maximum(
        jnp.linalg.norm(w_center, axis=1, keepdims=True), 1e-12
    )
    prob_ref = (radius * nx) @ nw.T
    loss_ref = -jnp.mean(jnp.sum(nx * nw[target], axis=1))
    assert jnp.allclose(feature, feat_ref, atol=3e-2, rtol=3e-2)
    assert jnp.allclose(prob, prob_ref, atol=1e-1, rtol=5e-2)
    assert jnp.allclose(center_loss, loss_ref, atol=5e-2, rtol=5e-2)

    print("KERNEL_OK")
</pallas_src>

<mosaic_0001>
module attributes {stable_mosaic.version = 11 : i64} {
  func.func @_fused_kernel(%arg0: i32, %arg1: i32, %arg2: memref<8x1024xbf16, #tpu.memory_space<vmem>>, %arg3: memref<1024x128xbf16, #tpu.memory_space<vmem>>, %arg4: memref<256x128xbf16, #tpu.memory_space<vmem>>, %arg5: memref<8x128xf32, #tpu.memory_space<vmem>>, %arg6: memref<8x256xf32, #tpu.memory_space<vmem>>, %arg7: memref<8x128xbf16, #tpu.memory_space<vmem>>) attributes {dimension_semantics = [#tpu.dimension_semantics<parallel>, #tpu.dimension_semantics<arbitrary>], iteration_bounds = array<i64: 1, 1>, scalar_prefetch = 0 : i64, scratch_operands = 1 : i64, tpu.core_type = #tpu.core_type<tc>, window_params = [{pipeline_mode = #tpu.pipeline_mode<synchronous>, transform_indices = @transform_0, window_bounds = array<i64: 8, 1024>}, {pipeline_mode = #tpu.pipeline_mode<synchronous>, transform_indices = @transform_1, window_bounds = array<i64: 1024, 128>}, {transform_indices = @transform_2, window_bounds = array<i64: 256, 128>}, {pipeline_mode = #tpu.pipeline_mode<synchronous>, transform_indices = @transform_3, window_bounds = array<i64: 8, 128>}, {transform_indices = @transform_4, window_bounds = array<i64: 8, 256>}]} {
    %c0_i32 = arith.constant 0 : i32
    %0 = arith.cmpi eq, %arg1, %c0_i32 : i32
    %1 = arith.extui %0 : i1 to i32
    %c0_i32_0 = arith.constant 0 : i32
    %2 = arith.cmpi ne, %1, %c0_i32_0 : i32
    scf.if %2 {
      %c0_8 = arith.constant 0 : index
      %c0_9 = arith.constant 0 : index
      %17 = vector.load %arg2[%c0_8, %c0_9] : memref<8x1024xbf16, #tpu.memory_space<vmem>>, vector<8x1024xbf16>
      %c0_10 = arith.constant 0 : index
      %c0_11 = arith.constant 0 : index
      %18 = vector.load %arg3[%c0_10, %c0_11] : memref<1024x128xbf16, #tpu.memory_space<vmem>>, vector<1024x128xbf16>
      %cst_12 = arith.constant dense<0.000000e+00> : vector<8x128xf32>
      %19 = tpu.matmul %17, %18, %cst_12 {dimension_numbers = #tpu.dot_dimension_numbers<[1], [0], [0], [1], [0, 0, 1, 1], [], []>} : vector<8x1024xbf16>, vector<1024x128xbf16>, vector<8x128xf32> -> vector<8x128xf32>
      %c0_13 = arith.constant 0 : index
      %c0_14 = arith.constant 0 : index
      %20 = vector.load %arg5[%c0_13, %c0_14] : memref<8x128xf32, #tpu.memory_space<vmem>>, vector<8x128xf32>
      tpu.vector_store %arg5[%c0_13, %c0_14], %19 {strides = array<i32>} : memref<8x128xf32, #tpu.memory_space<vmem>>, vector<8x128xf32>,
      %21 = arith.mulf %19, %19 : vector<8x128xf32>
      %cst_15 = arith.constant dense<0.000000e+00> : vector<8xf32>
      %22 = vector.multi_reduction <add>, %21, %cst_15 [1] : vector<8x128xf32> to vector<8xf32>
      %23 = vector.shape_cast %22 : vector<8xf32> to vector<8x1xf32>
      %cst_16 = arith.constant 1.000000e+01 : f32
      %24 = vector.broadcast %cst_16 : f32 to vector<8x128xf32>
      %25 = arith.mulf %24, %19 : vector<8x128xf32>
      %cst_17 = arith.constant 1.000000e-24 : f32
      %26 = vector.broadcast %cst_17 : f32 to vector<8x1xf32>
      %27 = arith.maximumf %23, %26 : vector<8x1xf32>
      %28 = math.rsqrt %27 : vector<8x1xf32>
      %29 = vector.broadcast %28 : vector<8x1xf32> to vector<8x128xf32>
      %30 = arith.mulf %25, %29 : vector<8x128xf32>
      %31 = arith.truncf %30 : vector<8x128xf32> to vector<8x128xbf16>
      %c0_18 = arith.constant 0 : index
      %c0_19 = arith.constant 0 : index
      %32 = vector.load %arg7[%c0_18, %c0_19] : memref<8x128xbf16, #tpu.memory_space<vmem>>, vector<8x128xbf16>
      tpu.vector_store %arg7[%c0_18, %c0_19], %31 {strides = array<i32>} : memref<8x128xbf16, #tpu.memory_space<vmem>>, vector<8x128xbf16>,
    } else {
    }
    %c0 = arith.constant 0 : index
    %c0_1 = arith.constant 0 : index
    %3 = vector.load %arg4[%c0, %c0_1] : memref<256x128xbf16, #tpu.memory_space<vmem>>, vector<256x128xbf16>
    %4 = arith.extf %3 : vector<256x128xbf16> to vector<256x128xf32>
    %5 = arith.mulf %4, %4 : vector<256x128xf32>
    %cst = arith.constant dense<0.000000e+00> : vector<256xf32>
    %6 = vector.multi_reduction <add>, %5, %cst [1] : vector<256x128xf32> to vector<256xf32>
    %7 = vector.shape_cast %6 : vector<256xf32> to vector<256x1xf32>
    %cst_2 = arith.constant 1.000000e-24 : f32
    %8 = vector.broadcast %cst_2 : f32 to vector<256x1xf32>
    %9 = arith.maximumf %7, %8 : vector<256x1xf32>
    %10 = math.rsqrt %9 : vector<256x1xf32>
    %11 = vector.broadcast %10 : vector<256x1xf32> to vector<256x128xf32>
    %12 = arith.mulf %4, %11 : vector<256x128xf32>
    %13 = arith.truncf %12 : vector<256x128xf32> to vector<256x128xbf16>
    %c0_3 = arith.constant 0 : index
    %c0_4 = arith.constant 0 : index
    %14 = vector.load %arg7[%c0_3, %c0_4] : memref<8x128xbf16, #tpu.memory_space<vmem>>, vector<8x128xbf16>
    %cst_5 = arith.constant dense<0.000000e+00> : vector<8x256xf32>
    %15 = tpu.matmul %14, %13, %cst_5 {dimension_numbers = #tpu.dot_dimension_numbers<[1], [1], [0], [0], [0, 0, 1, 0], [], []>} : vector<8x128xbf16>, vector<256x128xbf16>, vector<8x256xf32> -> vector<8x256xf32>
    %c0_6 = arith.constant 0 : index
    %c0_7 = arith.constant 0 : index
    %16 = vector.load %arg6[%c0_6, %c0_7] : memref<8x256xf32, #tpu.memory_space<vmem>>, vector<8x256xf32>
    tpu.vector_store %arg6[%c0_6, %c0_7], %15 {strides = array<i32>} : memref<8x256xf32, #tpu.memory_space<vmem>>, vector<8x256xf32>,
    return
  }
  func.func @transform_0(%arg0: i32, %arg1: i32) -> (i32, i32) {
    %c0_i32 = arith.constant 0 : i32
    %c0_i32_0 = arith.constant 0 : i32
    return %arg0, %c0_i32 : i32, i32
  }
  func.func @transform_1(%arg0: i32, %arg1: i32) -> (i32, i32) {
    %c0_i32 = arith.constant 0 : i32
    %c0_i32_0 = arith.constant 0 : i32
    %c0_i32_1 = arith.constant 0 : i32
    return %c0_i32, %c0_i32_0 : i32, i32
  }
  func.func @transform_2(%arg0: i32, %arg1: i32) -> (i32, i32) {
    %c0_i32 = arith.constant 0 : i32
    %c0_i32_0 = arith.constant 0 : i32
    return %arg1, %c0_i32 : i32, i32
  }
  func.func @transform_3(%arg0: i32, %arg1: i32) -> (i32, i32) {
    %c0_i32 = arith.constant 0 : i32
    %c0_i32_0 = arith.constant 0 : i32
    return %arg0, %c0_i32 : i32, i32
  }
  func.func @transform_4(%arg0: i32, %arg1: i32) -> (i32, i32) {
    %c0_i32 = arith.constant 0 : i32
    return %arg0, %arg1 : i32, i32
  }
}

module attributes {stable_mosaic.version = 11 : i64} {
  func.func @_fused_kernel(%arg0: i32, %arg1: i32, %arg2: memref<8x1024xbf16, #tpu.memory_space<vmem>>, %arg3: memref<1024x128xbf16, #tpu.memory_space<vmem>>, %arg4: memref<256x128xbf16, #tpu.memory_space<vmem>>, %arg5: memref<8x128xf32, #tpu.memory_space<vmem>>, %arg6: memref<8x256xf32, #tpu.memory_space<vmem>>, %arg7: memref<8x128xbf16, #tpu.memory_space<vmem>>) attributes {dimension_semantics = [#tpu.dimension_semantics<parallel>, #tpu.dimension_semantics<arbitrary>], iteration_bounds = array<i64: 1, 1>, scalar_prefetch = 0 : i64, scratch_operands = 1 : i64, tpu.core_type = #tpu.core_type<tc>, window_params = [{transform_indices = @transform_0, window_bounds = array<i64: 8, 1024>}, {pipeline_mode = #tpu.pipeline_mode<synchronous>, transform_indices = @transform_1, window_bounds = array<i64: 1024, 128>}, {transform_indices = @transform_2, window_bounds = array<i64: 256, 128>}, {transform_indices = @transform_3, window_bounds = array<i64: 8, 128>}, {transform_indices = @transform_4, window_bounds = array<i64: 8, 256>}]} {
    %c0_i32 = arith.constant 0 : i32
    %0 = arith.cmpi eq, %arg1, %c0_i32 : i32
    %1 = arith.extui %0 : i1 to i32
    %c0_i32_0 = arith.constant 0 : i32
    %2 = arith.cmpi ne, %1, %c0_i32_0 : i32
    scf.if %2 {
      %c0_8 = arith.constant 0 : index
      %c0_9 = arith.constant 0 : index
      %17 = vector.load %arg2[%c0_8, %c0_9] : memref<8x1024xbf16, #tpu.memory_space<vmem>>, vector<8x1024xbf16>
      %c0_10 = arith.constant 0 : index
      %c0_11 = arith.constant 0 : index
      %18 = vector.load %arg3[%c0_10, %c0_11] : memref<1024x128xbf16, #tpu.memory_space<vmem>>, vector<1024x128xbf16>
      %cst_12 = arith.constant dense<0.000000e+00> : vector<8x128xf32>
      %19 = tpu.matmul %17, %18, %cst_12 {dimension_numbers = #tpu.dot_dimension_numbers<[1], [0], [0], [1], [0, 0, 1, 1], [], []>} : vector<8x1024xbf16>, vector<1024x128xbf16>, vector<8x128xf32> -> vector<8x128xf32>
      %c0_13 = arith.constant 0 : index
      %c0_14 = arith.constant 0 : index
      %20 = vector.load %arg5[%c0_13, %c0_14] : memref<8x128xf32, #tpu.memory_space<vmem>>, vector<8x128xf32>
      tpu.vector_store %arg5[%c0_13, %c0_14], %19 {strides = array<i32>} : memref<8x128xf32, #tpu.memory_space<vmem>>, vector<8x128xf32>,
      %21 = arith.mulf %19, %19 : vector<8x128xf32>
      %cst_15 = arith.constant dense<0.000000e+00> : vector<8xf32>
      %22 = vector.multi_reduction <add>, %21, %cst_15 [1] : vector<8x128xf32> to vector<8xf32>
      %23 = vector.shape_cast %22 : vector<8xf32> to vector<8x1xf32>
      %cst_16 = arith.constant 1.000000e+01 : f32
      %24 = vector.broadcast %cst_16 : f32 to vector<8x128xf32>
      %25 = arith.mulf %24, %19 : vector<8x128xf32>
      %cst_17 = arith.constant 1.000000e-24 : f32
      %26 = vector.broadcast %cst_17 : f32 to vector<8x1xf32>
      %27 = arith.maximumf %23, %26 : vector<8x1xf32>
      %28 = math.rsqrt %27 : vector<8x1xf32>
      %29 = vector.broadcast %28 : vector<8x1xf32> to vector<8x128xf32>
      %30 = arith.mulf %25, %29 : vector<8x128xf32>
      %31 = arith.truncf %30 : vector<8x128xf32> to vector<8x128xbf16>
      %c0_18 = arith.constant 0 : index
      %c0_19 = arith.constant 0 : index
      %32 = vector.load %arg7[%c0_18, %c0_19] : memref<8x128xbf16, #tpu.memory_space<vmem>>, vector<8x128xbf16>
      tpu.vector_store %arg7[%c0_18, %c0_19], %31 {strides = array<i32>} : memref<8x128xbf16, #tpu.memory_space<vmem>>, vector<8x128xbf16>,
    } else {
    }
    %c0 = arith.constant 0 : index
    %c0_1 = arith.constant 0 : index
    %3 = vector.load %arg4[%c0, %c0_1] : memref<256x128xbf16, #tpu.memory_space<vmem>>, vector<256x128xbf16>
    %4 = arith.extf %3 : vector<256x128xbf16> to vector<256x128xf32>
    %5 = arith.mulf %4, %4 : vector<256x128xf32>
    %cst = arith.constant dense<0.000000e+00> : vector<256xf32>
    %6 = vector.multi_reduction <add>, %5, %cst [1] : vector<256x128xf32> to vector<256xf32>
    %7 = vector.shape_cast %6 : vector<256xf32> to vector<256x1xf32>
    %cst_2 = arith.constant 1.000000e-24 : f32
    %8 = vector.broadcast %cst_2 : f32 to vector<256x1xf32>
    %9 = arith.maximumf %7, %8 : vector<256x1xf32>
    %10 = math.rsqrt %9 : vector<256x1xf32>
    %11 = vector.broadcast %10 : vector<256x1xf32> to vector<256x128xf32>
    %12 = arith.mulf %4, %11 : vector<256x128xf32>
    %13 = arith.truncf %12 : vector<256x128xf32> to vector<256x128xbf16>
    %c0_3 = arith.constant 0 : index
    %c0_4 = arith.constant 0 : index
    %14 = vector.load %arg7[%c0_3, %c0_4] : memref<8x128xbf16, #tpu.memory_space<vmem>>, vector<8x128xbf16>
    %cst_5 = arith.constant dense<0.000000e+00> : vector<8x256xf32>
    %15 = tpu.matmul %14, %13, %cst_5 {dimension_numbers = #tpu.dot_dimension_numbers<[1], [1], [0], [0], [0, 0, 1, 0], [], []>} : vector<8x128xbf16>, vector<256x128xbf16>, vector<8x256xf32> -> vector<8x256xf32>
    %c0_6 = arith.constant 0 : index
    %c0_7 = arith.constant 0 : index
    %16 = vector.load %arg6[%c0_6, %c0_7] : memref<8x256xf32, #tpu.memory_space<vmem>>, vector<8x256xf32>
    tpu.vector_store %arg6[%c0_6, %c0_7], %15 {strides = array<i32>} : memref<8x256xf32, #tpu.memory_space<vmem>>, vector<8x256xf32>,
    return
  }
  func.func @transform_0(%arg0: i32, %arg1: i32) -> (i32, i32) {
    %c0_i32 = arith.constant 0 : i32
    %c0_i32_0 = arith.constant 0 : i32
    return %arg0, %c0_i32 : i32, i32
  }
  func.func @transform_1(%arg0: i32, %arg1: i32) -> (i32, i32) {
    %c0_i32 = arith.constant 0 : i32
    %c0_i32_0 = arith.constant 0 : i32
    %c0_i32_1 = arith.constant 0 : i32
    return %c0_i32, %c0_i32_0 : i32, i32
  }
  func.func @transform_2(%arg0: i32, %arg1: i32) -> (i32, i32) {
    %c0_i32 = arith.constant 0 : i32
    %c0_i32_0 = arith.constant 0 : i32
    return %arg1, %c0_i32 : i32, i32
  }
  func.func @transform_3(%arg0: i32, %arg1: i32) -> (i32, i32) {
    %c0_i32 = arith.constant 0 : i32
    %c0_i32_0 = arith.constant 0 : i32
    return %arg0, %c0_i32 : i32, i32
  }
  func.func @transform_4(%arg0: i32, %arg1: i32) -> (i32, i32) {
    %c0_i32 = arith.constant 0 : i32
    return %arg0, %arg1 : i32, i32
  }
}

</mosaic_0001>

<bundles_post_ra>
// kernel: tpu_custom_call.1
= control target key start
LH: loop header
LB: loop body
LE: loop exit
PB: predicated region body
PF: predicated region fallthrough
CT: control target
= control target key end

     0   :  { %10 = vsyncpa [#allocation4], 0  ;;  %s1913_s0 = inlined_call_operand.hbm [shape: bf16[8,1024], index: 0, kind: input, shape index: {}]   ;;  %s1914_s1 = inlined_call_operand.hbm [shape: bf16[1024,128], index: 1, kind: input, shape index: {}]   ;;  %s1915_s2 = inlined_call_operand.hbm [shape: bf16[256,128], index: 2, kind: input, shape index: {}]   ;;  %s1916_s3 = inlined_call_operand.hbm [shape: f32[8,128], index: 3, kind: output, shape index: {0}]   ;;  %s1917_s4 = inlined_call_operand.hbm [shape: f32[8,256], index: 4, kind: output, shape index: {1}]  }
   0x1   :  { %11 = vsyncpa [#allocation7], 0 }
   0x2   :  { %12 = vsyncpa [#allocation5], 0 }
   0x3   :  { %13 = vsyncpa [#allocation11], 0  ;;  %s1642_s15 = smov [#allocation6]   ;;  %s1524_s19 = scalar_lea.hbm %s1914_s1, 8192 }
   0x4   :  { %s29_s16 = sshll.u32 %s1642_s15, 4  ;;  %p1525_p0 = scmp.ne.s32.totalorder %s1914_s1, %s1524_s19  ;;  %s30_s16 = int_to_ptr.vmem [resolvable:$true] %s29_s16 }
   0x5   :  { %p1528_p1 = scmp.lt.u32.totalorder %s1524_s19, %s1914_s1 }
   0x7   :  { %p1530_p2 = pnand %p1528_p1, %p1525_p0 }
   0x9   :  { %1533 = shalt.err (!%p1530_p2)
}
   0xa   :  { %s1534_s24 = scalar_lea.vmem %s30_s16, 8192  ;;  %p1539_p4 = scmp.lt.s32.totalorder %s30_s16, %s30_s16 }
   0xb   :  { %p1535_p3 = scmp.ne.s32.totalorder %s30_s16, %s1534_s24  ;;  %p1540_p5 = scmp.lt.s32.totalorder %s1534_s24, %s1534_s24 }
   0xd   :  { %p1541_p6 = por %p1540_p5, %p1539_p4 }
   0xf   :  { %p1542_p7 = pnand %p1541_p6, %p1535_p3 }
  0x11   :  { %1545 = shalt.err (!%p1542_p7)
}
  0x12   :  { %s1643_s25 = smov 64   ;;  %s1644_s26 = smov 4  }
  0x13   :  { %35 = dma.hbm_to_vmem [thread:$0]  %s1914_s1, 8192, %s30_s16, [#allocation7], %s1643_s25, %s1643_s25, %s1644_s26  }
  0x14   :  { %s1645_s29 = smov [#allocation3]   ;;  %s1646_s5 = smov [#allocation8]  }
  0x15   :  { %s20_s30 = sshll.u32 %s1645_s29, 4  ;;  %s41_s6 = sshll.u32 %s1646_s5, 4  ;;  %s21_s30 = int_to_ptr.vmem [resolvable:$true] %s20_s30  ;;  %s42_s6 = int_to_ptr.vmem [resolvable:$true] %s41_s6 }
  0x16   :  { %s1546_s9 = scalar_lea.hbm %s1913_s0, 512 }
  0x17   :  { %p1547_p8 = scmp.ne.s32.totalorder %s1913_s0, %s1546_s9  ;;  %p1550_p9 = scmp.lt.u32.totalorder %s1546_s9, %s1913_s0 }
  0x19   :  { %p1552_p10 = pnand %p1550_p9, %p1547_p8 }
  0x1b   :  { %1555 = shalt.err (!%p1552_p10)
}
  0x1c   :  { %s1556_s1 = scalar_lea.vmem %s21_s30, 512  ;;  %p1561_p12 = scmp.lt.s32.totalorder %s21_s30, %s21_s30 }
  0x1d   :  { %p1557_p11 = scmp.ne.s32.totalorder %s21_s30, %s1556_s1  ;;  %p1562_p13 = scmp.lt.s32.totalorder %s1556_s1, %s1556_s1 }
  0x1f   :  { %p1563_p0 = por %p1562_p13, %p1561_p12 }
  0x21   :  { %p1564_p1 = pnand %p1563_p0, %p1557_p11 }
  0x23   :  { %1567 = shalt.err (!%p1564_p1)
}
  0x24   :  { %23 = dma.hbm_to_vmem [thread:$0]  %s1913_s0, 512, %s21_s30, [#allocation4]  }
  0x25   :  { %s1568_s18 = scalar_lea.hbm %s1915_s2, 2048 }
  0x26   :  { %p1569_p2 = scmp.ne.s32.totalorder %s1915_s2, %s1568_s18  ;;  %p1572_p3 = scmp.lt.u32.totalorder %s1568_s18, %s1915_s2 }
  0x28   :  { %p1574_p4 = pnand %p1572_p3, %p1569_p2 }
  0x2a   :  { %1577 = shalt.err (!%p1574_p4)
}
  0x2b   :  { %s1578_s23 = scalar_lea.vmem %s42_s6, 2048  ;;  %p1583_p6 = scmp.lt.s32.totalorder %s42_s6, %s42_s6 }
  0x2c   :  { %p1579_p5 = scmp.ne.s32.totalorder %s42_s6, %s1578_s23  ;;  %p1584_p7 = scmp.lt.s32.totalorder %s1578_s23, %s1578_s23 }
  0x2e   :  { %p1585_p8 = por %p1584_p7, %p1583_p6 }
  0x30   :  { %p1586_p9 = pnand %p1585_p8, %p1579_p5 }
  0x32   :  { %1589 = shalt.err (!%p1586_p9)
}
  0x33   :  { %47 = dma.hbm_to_vmem [thread:$0]  %s1915_s2, 2048, %s42_s6, [#allocation7], %s1643_s25, %s1643_s25, %s1644_s26  }
  0x34   :  { %1634 = dma.done.wait [#allocation4], 512  }
  0x35   :  { %1635 = vsyncadd [#allocation4], 4294966784 }
  0x36   :  { %1636 = dma.done.wait [#allocation7], 10240  }
  0x37   :  { %1637 = vsyncadd [#allocation7], 4294957056  ;;  %v1386_v0 = vld [vmem:[#allocation6 + $0x40] sm:$0xff]   ;;  %v1388_v2 = vld [vmem:[#allocation6 + $0x48] sm:$0xff]   ;;  %s1647_s2 = smov [#allocation9]  }
  0x38   :  { %v1387_v1 = vld [vmem:[#allocation6] sm:$0xff]   ;;  %1273 = vmatprep.subr.bf16.mxu1 %v1386_v0  ;;  %v1389_v3 = vld [vmem:[#allocation6 + $0x8] sm:$0xff]   ;;  %v1390_v4 = vld [vmem:[#allocation6 + $0x50] sm:$0xff]   ;;  %s1098_s25 = sshll.u32 %s1647_s2, 4  ;;  %s1099_s25 = int_to_ptr.vmem [resolvable:$true] %s1098_s25 }
  0x39   :  { %1274 = vmatpush3.bf16.msra.mxu1 %v1387_v1  ;;  %v1391_v5 = vld [vmem:[#allocation6 + $0x10] sm:$0xff]   ;;  %v1392_v6 = vld [vmem:[#allocation6 + $0x58] sm:$0xff]   ;;  %v1394_v8 = vld [vmem:[#allocation6 + $0x60] sm:$0xff]   ;;  %s1590_s26 = scalar_lea.vmem %s1099_s25, 128  ;;  %p1595_p11 = scmp.lt.s32.totalorder %s1099_s25, %s1099_s25 }
  0x3a   :  { %1275 = vmatprep.subr.bf16.mxu1 %v1388_v2  ;;  %v1393_v7 = vld [vmem:[#allocation6 + $0x18] sm:$0xff]   ;;  %v1395_v9 = vld [vmem:[#allocation6 + $0x20] sm:$0xff]   ;;  %v1396_v10 = vld [vmem:[#allocation6 + $0x68] sm:$0xff]   ;;  %p1591_p10 = scmp.ne.s32.totalorder %s1099_s25, %s1590_s26  ;;  %p1596_p12 = scmp.lt.s32.totalorder %s1590_s26, %s1590_s26 }
  0x3b   :  { %v62_v11 = vld [vmem:[#allocation3] sm:$0xff]  ;;  %v1397_v12 = vld [vmem:[#allocation6 + $0x28] sm:$0xff]   ;;  %v1398_v14 = vld [vmem:[#allocation6 + $0x70] sm:$0xff]  }
  0x3c   :  { %v1123_v13 = vcombine.high %v62_v11, %v62_v11  ;;  %v1406_v15 = vld [vmem:[#allocation6 + $0x140] sm:$0xff]   ;;  %v1399_v17 = vld [vmem:[#allocation6 + $0x30] sm:$0xff]   ;;  %v1400_v18 = vld [vmem:[#allocation6 + $0x78] sm:$0xff]   ;;  %v1122_v26 = vcombine.low %v62_v11, %v62_v11  ;;  %p1597_p13 = por %p1596_p12, %p1595_p11 }
  0x3d   :  { %1276 = vmatpush3.bf16.msra.mxu1 %v1389_v3  ;;  %v1407_v16 = vld [vmem:[#allocation6 + $0x100] sm:$0xff]   ;;  %1317 = vmatprep.subr.bf16.mxu0 %v1406_v15  ;;  %v1410_v19 = vld [vmem:[#allocation6 + $0x148] sm:$0xff]   ;;  %v1401_v21 = vld [vmem:[#allocation6 + $0x38] sm:$0xff]  }
  0x3e   :  { %1277 = vmatprep.subr.bf16.mxu1 %v1390_v4  ;;  %638 = vmatprep.mubr.bf16.mxu1 %v1123_v13  ;;  %v1411_v20 = vld [vmem:[#allocation6 + $0x108] sm:$0xff]   ;;  %v1404_v22 = vld [vmem:[#allocation6 + $0xc0] sm:$0xff]   ;;  %v1414_v23 = vld [vmem:[#allocation6 + $0x150] sm:$0xff]   ;;  %p1598_p0 = pnand %p1597_p13, %p1591_p10 }
  0x3f   :  { %1318 = vmatpush3.bf16.msra.mxu0 %v1407_v16  ;;  %v1415_v24 = vld [vmem:[#allocation6 + $0x110] sm:$0xff]   ;;  %v1405_v25 = vld [vmem:[#allocation6 + $0x80] sm:$0xff]   ;;  %v1408_v27 = vld [vmem:[#allocation6 + $0xc8] sm:$0xff]  }
  0x40   :  { %1319 = vmatprep.subr.bf16.mxu0 %v1410_v19  ;;  %v1418_v28 = vld [vmem:[#allocation6 + $0x158] sm:$0xff]   ;;  %v1409_v30 = vld [vmem:[#allocation6 + $0x88] sm:$0xff]   ;;  %v1412_v31 = vld [vmem:[#allocation6 + $0xd0] sm:$0xff]  }
  0x41   :  { %1278 = vmatpush3.bf16.msra.mxu1 %v1391_v5  ;;  %v1419_v29 = vld [vmem:[#allocation6 + $0x118] sm:$0xff]   ;;  %v1422_v32 = vld [vmem:[#allocation6 + $0x160] sm:$0xff]   ;;  %v1413_v34 = vld [vmem:[#allocation6 + $0x90] sm:$0xff]  }
  0x42   :  { %1279 = vmatprep.subr.bf16.mxu1 %v1392_v6  ;;  %v1423_v33 = vld [vmem:[#allocation6 + $0x120] sm:$0xff]   ;;  %v1416_v35 = vld [vmem:[#allocation6 + $0xd8] sm:$0xff]   ;;  %v1426_v36 = vld [vmem:[#allocation6 + $0x168] sm:$0xff]  }
  0x43   :  { %1320 = vmatpush3.bf16.msra.mxu0 %v1411_v20  ;;  %v1427_v37 = vld [vmem:[#allocation6 + $0x128] sm:$0xff]   ;;  %v1417_v38 = vld [vmem:[#allocation6 + $0x98] sm:$0xff]   ;;  %v1420_v39 = vld [vmem:[#allocation6 + $0xe0] sm:$0xff]  }
  0x44   :  { %1321 = vmatprep.subr.bf16.mxu0 %v1414_v23  ;;  %v1430_v40 = vld [vmem:[#allocation6 + $0x170] sm:$0xff]   ;;  %v1421_v42 = vld [vmem:[#allocation6 + $0xa0] sm:$0xff]   ;;  %v1424_v43 = vld [vmem:[#allocation6 + $0xe8] sm:$0xff]  }
  0x45   :  { %1280 = vmatpush3.bf16.msra.mxu1 %v1393_v7  ;;  %v1431_v41 = vld [vmem:[#allocation6 + $0x130] sm:$0xff]   ;;  %v1434_v44 = vld [vmem:[#allocation6 + $0x178] sm:$0xff]   ;;  %v63_v45 = vld [vmem:[#allocation3 + $0x8] sm:$0xff] }
  0x46   :  { %1281 = vmatprep.subr.bf16.mxu1 %v1394_v8  ;;  %v1125_v46 = vcombine.high %v63_v45, %v63_v45  ;;  %v1437_v47 = vld [vmem:[#allocation6 + $0x138] sm:$0xff]   ;;  %v64_v48 = vld [vmem:[#allocation3 + $0x10] sm:$0xff]  ;;  %v1425_v51 = vld [vmem:[#allocation6 + $0xa8] sm:$0xff]   ;;  %v1124_v57 = vcombine.low %v63_v45, %v63_v45 }
  0x47   :  { %1322 = vmatpush3.bf16.msra.mxu0 %v1415_v24  ;;  %v1126_v49 = vcombine.low %v64_v48, %v64_v48  ;;  %v1127_v50 = vcombine.high %v64_v48, %v64_v48  ;;  %v1428_v52 = vld [vmem:[#allocation6 + $0xf0] sm:$0xff]   ;;  %v1432_v54 = vld [vmem:[#allocation6 + $0xf8] sm:$0xff]   ;;  %v1438_v56 = vld [vmem:[#allocation6 + $0x1c0] sm:$0xff]  }
  0x48   :  { %1323 = vmatprep.subr.bf16.mxu0 %v1418_v28  ;;  %v1429_v53 = vld [vmem:[#allocation6 + $0xb0] sm:$0xff]   ;;  %v1433_v55 = vld [vmem:[#allocation6 + $0xb8] sm:$0xff]   ;;  %v1441_v58 = vld [vmem:[#allocation6 + $0x180] sm:$0xff]  }
  0x49   :  { %1282 = vmatpush3.bf16.msra.mxu1 %v1395_v9  ;;  %718 = vmatprep.mubr.bf16.mxu0 %v1127_v50  ;;  %v1442_v59 = vld [vmem:[#allocation6 + $0x1c8] sm:$0xff]   ;;  %v65_v60 = vld [vmem:[#allocation3 + $0x18] sm:$0xff]  ;;  %v1444_v63 = vld [vmem:[#allocation6 + $0x1d0] sm:$0xff]  }
  0x4a   :  { %1283 = vmatprep.subr.bf16.mxu1 %v1396_v10  ;;  %v1129_v61 = vcombine.high %v65_v60, %v65_v60  ;;  %v1443_v62 = vld [vmem:[#allocation6 + $0x188] sm:$0xff]   ;;  %v1445_v0 = vld [vmem:[#allocation6 + $0x190] sm:$0xff]   ;;  %v1446_v1 = vld [vmem:[#allocation6 + $0x1d8] sm:$0xff]   ;;  %v1128_v11 = vcombine.low %v65_v60, %v65_v60 }
  0x4b   :  { %1324 = vmatpush3.bf16.msra.mxu0 %v1419_v29  ;;  %v1447_v2 = vld [vmem:[#allocation6 + $0x198] sm:$0xff]   ;;  %v1448_v3 = vld [vmem:[#allocation6 + $0x1e0] sm:$0xff]   ;;  %v1450_v5 = vld [vmem:[#allocation6 + $0x1e8] sm:$0xff]  }
  0x4c   :  { %1325 = vmatprep.subr.bf16.mxu0 %v1422_v32  ;;  %v1449_v4 = vld [vmem:[#allocation6 + $0x1a0] sm:$0xff]   ;;  %v1451_v6 = vld [vmem:[#allocation6 + $0x1a8] sm:$0xff]   ;;  %v1452_v7 = vld [vmem:[#allocation6 + $0x1f0] sm:$0xff]  }
  0x4d   :  { %1284 = vmatpush3.bf16.msra.mxu1 %v1397_v12  ;;  %v1453_v8 = vld [vmem:[#allocation6 + $0x1b0] sm:$0xff]   ;;  %v1454_v9 = vld [vmem:[#allocation6 + $0x1f8] sm:$0xff]   ;;  %v1265_v12 = vld [vmem:[#allocation8 + $0x40] sm:$0xff]  }
  0x4e   :  { %1285 = vmatprep.subr.bf16.mxu1 %v1398_v14  ;;  %v1455_v10 = vld [vmem:[#allocation6 + $0x1b8] sm:$0xff]   ;;  %v1195_v13 = vld [vmem:[#allocation8] sm:$0xff]   ;;  %v1716_v14 = vunpack.c.l.bf16 %v1265_v12  ;;  %v1718_v15 = vunpack.c.h.bf16 %v1265_v12  ;;  %v1270_v60 = vld [vmem:[#allocation8 + $0x68] sm:$0xff]  }
  0x4f   :  { %1326 = vmatpush3.bf16.msra.mxu0 %v1423_v33  ;;  %v1720_v16 = vunpack.c.l.bf16 %v1195_v13 }
  0x50   :  { %1327 = vmatprep.subr.bf16.mxu0 %v1426_v36  ;;  %v856_v19 = vmul.f32 %v1716_v14, %v1716_v14 }
  0x51   :  { %1286 = vmatpush3.bf16.msra.mxu1 %v1399_v17  ;;  %v1722_v17 = vunpack.c.h.bf16 %v1195_v13  ;;  %v840_v20 = vmul.f32 %v1720_v16, %v1720_v16 }
  0x52   :  { %1287 = vmatprep.subr.bf16.mxu1 %v1400_v18  ;;  %v1266_v18 = vld [vmem:[#allocation8 + $0x48] sm:$0xff]   ;;  %904 = vadd.xlane.f32.xlu0 %v856_v19 }
  0x53   :  { %1328 = vmatpush3.bf16.msra.mxu0 %v1427_v37  ;;  %872 = vadd.xlane.f32.xlu1 %v840_v20  ;;  %v1732_v23 = vunpack.c.l.bf16 %v1266_v18  ;;  %v1734_v24 = vunpack.c.h.bf16 %v1266_v18 }
  0x54   :  { %1329 = vmatprep.subr.bf16.mxu0 %v1430_v40 }
  0x55   :  { %1288 = vmatpush3.bf16.msra.mxu1 %v1401_v21  ;;  %v857_v21 = vmul.f32 %v1718_v15, %v1718_v15 }
  0x56   :  { %1295 = vmatprep.subr.bf16.mxu1 %v1404_v22  ;;  %v841_v22 = vmul.f32 %v1722_v17, %v1722_v17 }
  0x57   :  { %1330 = vmatpush3.bf16.msra.mxu0 %v1431_v41  ;;  %906 = vadd.xlane.f32.xlu0 %v857_v21 }
  0x58   :  { %639 = vmatmul.mubr.bf16.vlgmr.msra.gmra.mrb[0].mxu1 %v1122_v26  ;;  %1331 = vmatprep.subr.bf16.mxu0 %v1434_v44  ;;  %v858_v26 = vmul.f32 %v1732_v23, %v1732_v23 }
  0x59   :  { %1296 = vmatpush3.bf16.msra.mxu1 %v1405_v25  ;;  %678 = vmatprep.mubr.bf16.mxu1 %v1125_v46  ;;  %v1258_v25 = vld [vmem:[#allocation8 + $0x8] sm:$0xff]  }
  0x5a   :  { %1297 = vmatprep.subr.bf16.mxu1 %v1408_v27  ;;  %874 = vadd.xlane.f32.xlu1 %v841_v22  ;;  %v859_v27 = vmul.f32 %v1734_v24, %v1734_v24  ;;  %v1740_v28 = vunpack.c.l.bf16 %v1258_v25  ;;  %v1742_v29 = vunpack.c.h.bf16 %v1258_v25  ;;  %v1272_v22 = vld [vmem:[#allocation8 + $0x78] sm:$0xff]  }
  0x5b   :  { %1332 = vmatpush3.bf16.msra.mxu0 %v1437_v47  ;;  %908 = vadd.xlane.f32.xlu0 %v858_v26  ;;  %v1260_v47 = vld [vmem:[#allocation8 + $0x18] sm:$0xff]   ;;  %v1828_v25 = vunpack.c.h.bf16 %v1272_v22  ;;  %v1830_v26 = vunpack.c.l.bf16 %v1272_v22 }
  0x5c   :  { %v843_v32 = vmul.f32 %v1742_v29, %v1742_v29  ;;  %v1772_v48 = vunpack.c.l.bf16 %v1260_v47 }
  0x5d   :  { %1298 = vmatpush3.bf16.msra.mxu1 %v1409_v30  ;;  %v1267_v30 = vld [vmem:[#allocation8 + $0x50] sm:$0xff]  }
  0x5e   :  { %1299 = vmatprep.subr.bf16.mxu1 %v1412_v31  ;;  %719 = vmatmul.mubr.bf16.vlgmr.msra.gmra.mrb[0].mxu0 %v1126_v49  ;;  %v842_v31 = vmul.f32 %v1740_v28, %v1740_v28  ;;  %v1748_v33 = vunpack.c.l.bf16 %v1267_v30  ;;  %v1774_v49 = vunpack.c.h.bf16 %v1260_v47  ;;  %v846_v50 = vmul.f32 %v1772_v48, %v1772_v48 }
  0x5f   :  { %910 = vadd.xlane.f32.xlu1 %v859_v27  ;;  %v871_v27 = vmul.f32 %v1828_v25, %v1828_v25 }
  0x60   :  { %876 = vadd.xlane.f32.xlu0 %v842_v31  ;;  %v860_v36 = vmul.f32 %v1748_v33, %v1748_v33  ;;  %v1836_v31 = vld [vmem:[#allocation8 + $0x38] sm:$0xff]  }
  0x61   :  { %1300 = vmatpush3.bf16.msra.mxu1 %v1413_v34  ;;  %v1750_v34 = vunpack.c.h.bf16 %v1267_v30  ;;  %v870_v30 = vmul.f32 %v1830_v26, %v1830_v26 }
  0x62   :  { %1301 = vmatprep.subr.bf16.mxu1 %v1416_v35  ;;  %v1259_v35 = vld [vmem:[#allocation8 + $0x10] sm:$0xff]  }
  0x63   :  { %878 = vadd.xlane.f32.xlu1 %v843_v32  ;;  %v861_v37 = vmul.f32 %v1750_v34, %v1750_v34  ;;  %v1839_v32 = vunpack.c.l.bf16 %v1836_v31 }
  0x64   :  { %912 = vadd.xlane.f32.xlu0 %v860_v36 }
  0x65   :  { %1302 = vmatpush3.bf16.msra.mxu1 %v1417_v38  ;;  %v1756_v38 = vunpack.c.l.bf16 %v1259_v35 }
  0x66   :  { %1303 = vmatprep.subr.bf16.mxu1 %v1420_v39  ;;  %v1758_v39 = vunpack.c.h.bf16 %v1259_v35  ;;  %v854_v35 = vmul.f32 %v1839_v32, %v1839_v32 }
  0x67   :  { %914 = vadd.xlane.f32.xlu1 %v861_v37  ;;  %v844_v40 = vmul.f32 %v1756_v38, %v1756_v38 }
  0x68   :  { %v845_v41 = vmul.f32 %v1758_v39, %v1758_v39 }
  0x69   :  { %1304 = vmatpush3.bf16.msra.mxu1 %v1421_v42  ;;  %880 = vadd.xlane.f32.xlu0 %v844_v40  ;;  %v1268_v42 = vld [vmem:[#allocation8 + $0x58] sm:$0xff]  }
  0x6a   :  { %1305 = vmatprep.subr.bf16.mxu1 %v1424_v43  ;;  %v1764_v43 = vunpack.c.l.bf16 %v1268_v42  ;;  %v1766_v44 = vunpack.c.h.bf16 %v1268_v42 }
  0x6b   :  { %882 = vadd.xlane.f32.xlu1 %v845_v41 }
  0x6c   :  { %v862_v45 = vmul.f32 %v1764_v43, %v1764_v43  ;;  %v863_v46 = vmul.f32 %v1766_v44, %v1766_v44 }
  0x6d   :  { %1306 = vmatpush3.bf16.msra.mxu1 %v1425_v51  ;;  %v847_v51 = vmul.f32 %v1774_v49, %v1774_v49 }
  0x6e   :  { %1307 = vmatprep.subr.bf16.mxu1 %v1428_v52  ;;  %916 = vadd.xlane.f32.xlu0 %v862_v45  ;;  %v1269_v52 = vld [vmem:[#allocation8 + $0x60] sm:$0xff]  }
  0x6f   :  { %918 = vadd.xlane.f32.xlu1 %v863_v46 }
  0x71   :  { %1308 = vmatpush3.bf16.msra.mxu1 %v1429_v53  ;;  %v1261_v53 = vld [vmem:[#allocation8 + $0x20] sm:$0xff]  }
  0x72   :  { %1309 = vmatprep.subr.bf16.mxu1 %v1432_v54  ;;  %v1780_v54 = vunpack.c.l.bf16 %v1269_v52  ;;  %884 = vadd.xlane.f32.xlu0 %v846_v50 }
  0x73   :  { %886 = vadd.xlane.f32.xlu1 %v847_v51 }
  0x75   :  { %1310 = vmatpush3.bf16.msra.mxu1 %v1433_v55  ;;  %v1782_v55 = vunpack.c.h.bf16 %v1269_v52 }
  0x76   :  { %1339 = vmatprep.subr.bf16.mxu1 %v1438_v56  ;;  %v1784_v56 = vunpack.c.l.bf16 %v1261_v53 }
  0x78   :  { %679 = vmatmul.mubr.bf16.vlgmr.msra.gmra.mrb[4].mxu1 %v1124_v57  ;;  %v1786_v57 = vunpack.c.h.bf16 %v1261_v53 }
  0x79   :  { %1340 = vmatpush3.bf16.msra.mxu1 %v1441_v58  ;;  %758 = vmatprep.mubr.bf16.mxu1 %v1129_v61  ;;  %v864_v58 = vmul.f32 %v1780_v54, %v1780_v54  ;;  %v848_v61 = vmul.f32 %v1784_v56, %v1784_v56 }
  0x7a   :  { %1341 = vmatprep.subr.bf16.mxu1 %v1442_v59  ;;  %v865_v59 = vmul.f32 %v1782_v55, %v1782_v55 }
  0x7b   :  { %920 = vadd.xlane.f32.xlu0 %v864_v58 }
  0x7c   :  { %922 = vadd.xlane.f32.xlu1 %v865_v59 }
  0x7d   :  { %1342 = vmatpush3.bf16.msra.mxu1 %v1443_v62  ;;  %v849_v62 = vmul.f32 %v1786_v57, %v1786_v57 }
  0x7e   :  { %1343 = vmatprep.subr.bf16.mxu1 %v1444_v63  ;;  %v1796_v63 = vunpack.c.l.bf16 %v1270_v60 }
  0x7f   :  { %888 = vadd.xlane.f32.xlu0 %v848_v61 }
  0x80   :  { %890 = vadd.xlane.f32.xlu1 %v849_v62 }
  0x81   :  { %1344 = vmatpush3.bf16.msra.mxu1 %v1445_v0  ;;  %v1798_v0 = vunpack.c.h.bf16 %v1270_v60 }
  0x82   :  { %1345 = vmatprep.subr.bf16.mxu1 %v1446_v1  ;;  %v1262_v1 = vld [vmem:[#allocation8 + $0x28] sm:$0xff]  }
  0x85   :  { %1346 = vmatpush3.bf16.msra.mxu1 %v1447_v2  ;;  %v866_v2 = vmul.f32 %v1796_v63, %v1796_v63 }
  0x86   :  { %1347 = vmatprep.subr.bf16.mxu1 %v1448_v3  ;;  %v867_v3 = vmul.f32 %v1798_v0, %v1798_v0 }
  0x87   :  { %924 = vadd.xlane.f32.xlu0 %v866_v2 }
  0x88   :  { %926 = vadd.xlane.f32.xlu1 %v867_v3 }
  0x89   :  { %1348 = vmatpush3.bf16.msra.mxu1 %v1449_v4  ;;  %v1804_v4 = vunpack.c.l.bf16 %v1262_v1 }
  0x8a   :  { %1349 = vmatprep.subr.bf16.mxu1 %v1450_v5  ;;  %v1806_v5 = vunpack.c.h.bf16 %v1262_v1 }
  0x8d   :  { %1350 = vmatpush3.bf16.msra.mxu1 %v1451_v6  ;;  %v1271_v6 = vld [vmem:[#allocation8 + $0x70] sm:$0xff]  }
  0x8e   :  { %1351 = vmatprep.subr.bf16.mxu1 %v1452_v7  ;;  %v850_v7 = vmul.f32 %v1804_v4, %v1804_v4 }
  0x90   :  { %892 = vadd.xlane.f32.xlu0 %v850_v7 }
  0x91   :  { %1352 = vmatpush3.bf16.msra.mxu1 %v1453_v8  ;;  %v851_v8 = vmul.f32 %v1806_v5, %v1806_v5 }
  0x92   :  { %1353 = vmatprep.subr.bf16.mxu1 %v1454_v9  ;;  %v1812_v9 = vunpack.c.l.bf16 %v1271_v6 }
  0x93   :  { %894 = vadd.xlane.f32.xlu1 %v851_v8 }
  0x94   :  { %v868_v12 = vmul.f32 %v1812_v9, %v1812_v9 }
  0x95   :  { %1354 = vmatpush3.bf16.msra.mxu1 %v1455_v10  ;;  %v1814_v10 = vunpack.c.h.bf16 %v1271_v6 }
  0x96   :  { %928 = vadd.xlane.f32.xlu0 %v868_v12 }
  0x97   :  { %v869_v13 = vmul.f32 %v1814_v10, %v1814_v10 }
  0x98   :  { %759 = vmatmul.mubr.bf16.vlgmr.msra.gmra.mrb[8].mxu1 %v1128_v11  ;;  %v1263_v11 = vld [vmem:[#allocation8 + $0x30] sm:$0xff]  }
  0x99   :  { %v1820_v18 = vunpack.c.l.bf16 %v1263_v11  ;;  %v1822_v19 = vunpack.c.h.bf16 %v1263_v11  ;;  %930 = vadd.xlane.f32.xlu1 %v869_v13 }
  0x9b   :  { %v852_v20 = vmul.f32 %v1820_v18, %v1820_v18  ;;  %v853_v21 = vmul.f32 %v1822_v19, %v1822_v19 }
  0x9d   :  { %896 = vadd.xlane.f32.xlu0 %v852_v20  ;;  %898 = vadd.xlane.f32.xlu1 %v853_v21 }
  0xa1   :  { %934 = vadd.xlane.f32.xlu0 %v871_v27  ;;  %932 = vadd.xlane.f32.xlu1 %v870_v30 }
  0xa5   :  { %900 = vadd.xlane.f32.xlu1 %v854_v35 }
  0xdf   :  { %v905_v51 = vpop.xlane.xlu0 %904 }
  0xe0   :  { %v952_v53 = vmax.f32 %v905_v51, 1e-24  ;;  %v873_v58 = vpop.xlane.xlu1 %872 }
  0xe1   :  { %v936_v59 = vmax.f32 %v873_v58, 1e-24 }
  0xe2   :  { %1458 = vrsqrt.f32 %v952_v53 }
  0xe3   :  { %1460 = vrsqrt.f32 %v936_v59 }
  0xe4   :  { %v907_v60 = vpop.xlane.xlu0 %906 }
  0xe5   :  { %v953_v61 = vmax.f32 %v907_v60, 1e-24 }
  0xe7   :  { %v875_v62 = vpop.xlane.xlu1 %874  ;;  %1462 = vrsqrt.f32 %v953_v61 }
  0xe8   :  { %v937_v1 = vmax.f32 %v875_v62, 1e-24  ;;  %v909_v2 = vpop.xlane.xlu0 %908 }
  0xe9   :  { %v954_v3 = vmax.f32 %v909_v2, 1e-24 }
  0xea   :  { %1464 = vrsqrt.f32 %v937_v1 }
  0xeb   :  { %1466 = vrsqrt.f32 %v954_v3 }
  0xec   :  { %v911_v6 = vpop.xlane.xlu1 %910  ;;  %v1459_v13 = vpop.eup %1458 }
  0xed   :  { %v955_v7 = vmax.f32 %v911_v6, 1e-24  ;;  %v877_v12 = vpop.xlane.xlu0 %876  ;;  %v1461_v30 = vpop.eup %1460 }
  0xee   :  { %v938_v22 = vmax.f32 %v877_v12, 1e-24 }
  0xef   :  { %1468 = vrsqrt.f32 %v955_v7 }
  0xf0   :  { %v879_v27 = vpop.xlane.xlu1 %878  ;;  %1470 = vrsqrt.f32 %v938_v22 }
  0xf4   :  { %v915_v51 = vpop.xlane.xlu1 %914 }
  0xf5   :  { %v957_v58 = vmax.f32 %v915_v51, 1e-24 }
 0x12b   :  { %v1289_v36 = vpop.f32.mrb[0].mxu1 }
 0x12c   :  { %v1290_v37 = vpop.f32.mrb[1].mxu1 }
 0x12d   :  { %v1291_v40 = vadd.f32 %v1290_v37, %v1289_v36  ;;  %v1292_v41 = vpop.f32.mrb[2].mxu1  ;;  %v939_v36 = vmax.f32 %v879_v27, 1e-24 }
 0x12e   :  { %v1293_v42 = vpop.f32.mrb[3].mxu1  ;;  %v913_v41 = vpop.xlane.xlu0 %912 }
 0x12f   :  { %1472 = vrsqrt.f32 %v939_v36  ;;  %v1016_v42 = vmul.f32 %v1459_v13, %v1716_v14  ;;  %v883_v14 = vpop.xlane.xlu1 %882 }
 0x130   :  { %v941_v3 = vmax.f32 %v883_v14, 1e-24 }
 0x131   :  { %v1333_v45 = vpop.f32.mrb[0].mxu0 }
 0x132   :  { %v1334_v46 = vpop.f32.mrb[1].mxu0  ;;  %v881_v61 = vpop.xlane.xlu0 %880 }
 0x133   :  { %v1335_v47 = vadd.f32 %v1334_v46, %v1333_v45  ;;  %v1336_v50 = vpop.f32.mrb[2].mxu0  ;;  %v1463_v45 = vpop.eup %1462  ;;  %v940_v1 = vmax.f32 %v881_v61, 1e-24 }
 0x134   :  { %v1337_v52 = vpop.f32.mrb[3].mxu0  ;;  %v956_v50 = vmax.f32 %v913_v41, 1e-24  ;;  %v1465_v53 = vpop.eup %1464  ;;  %v1017_v59 = vmul.f32 %v1463_v45, %v1718_v15 }
 0x135   :  { %v1000_v52 = vmul.f32 %v1461_v30, %v1720_v16  ;;  %v1001_v60 = vmul.f32 %v1465_v53, %v1722_v17  ;;  %v1467_v62 = vpop.eup %1466  ;;  %v919_v13 = vpop.xlane.xlu1 %918 }
 0x136   :  { %1474 = vrsqrt.f32 %v956_v50  ;;  %v1018_v6 = vmul.f32 %v1467_v62, %v1732_v23  ;;  %v917_v12 = vpop.xlane.xlu0 %916  ;;  %v959_v22 = vmax.f32 %v919_v13, 1e-24  ;;  %v1864_v13 = vunpack.c.h.bf16 %v1836_v31 }
 0x137   :  { %1476 = vrsqrt.f32 %v957_v58  ;;  %v1032_v2 = vpack.c.bf16 %v1001_v60, %v1000_v52 }
 0x138   :  { %1478 = vrsqrt.f32 %v940_v1 }
 0x139   :  { %1480 = vrsqrt.f32 %v941_v3  ;;  %v887_v36 = vpop.xlane.xlu1 %886 }
 0x13a   :  { %v943_v41 = vmax.f32 %v887_v36, 1e-24 }
 0x13d   :  { %v923_v51 = vpop.xlane.xlu1 %922 }
 0x13e   :  { %v961_v53 = vmax.f32 %v923_v51, 1e-24 }
 0x14b   :  { %v1311_v8 = vpop.f32.mrb[4].mxu1 }
 0x14c   :  { %v1312_v11 = vpop.f32.mrb[5].mxu1 }
 0x14d   :  { %v1313_v20 = vadd.f32 %v1312_v11, %v1311_v8  ;;  %v1314_v21 = vpop.f32.mrb[6].mxu1 }
 0x14e   :  { %v1315_v35 = vpop.f32.mrb[7].mxu1  ;;  %v958_v21 = vmax.f32 %v917_v12, 1e-24 }
 0x14f   :  { %v681_v37 = vadd.f32 %v1313_v20, %v1291_v40  ;;  %v1040_v40 = vpack.c.bf16 %v1017_v59, %v1016_v42  ;;  %v885_v35 = vpop.xlane.xlu0 %884  ;;  %v891_v59 = vpop.xlane.xlu1 %890 }
 0x150   :  { %1482 = vrsqrt.f32 %v958_v21  ;;  %v945_v61 = vmax.f32 %v891_v59, 1e-24 }
 0x151   :  { %v1844_v46 = vadd.f32 %v1335_v47, %v681_v37  ;;  %v1469_v47 = vpop.eup %1468  ;;  %1361 = vmatprep.subr.bf16.mxu0 %v1040_v40  ;;  %1484 = vrsqrt.f32 %v959_v22  ;;  %v942_v37 = vmax.f32 %v885_v35, 1e-24 }
 0x152   :  { %1362 = vmatpush3.bf16.xpose.msra.mxu0 %v1032_v2  ;;  %v1019_v16 = vmul.f32 %v1469_v47, %v1734_v24  ;;  %v1471_v15 = vpop.eup %1470 }
 0x153   :  { %v1473_v17 = vpop.eup %1472  ;;  %v1002_v8 = vmul.f32 %v1471_v15, %v1740_v28  ;;  %1486 = vrsqrt.f32 %v942_v37  ;;  %v927_v15 = vpop.xlane.xlu1 %926 }
 0x154   :  { %v1041_v7 = vpack.c.bf16 %v1019_v16, %v1018_v6  ;;  %v1003_v11 = vmul.f32 %v1473_v17, %v1742_v29  ;;  %v1475_v20 = vpop.eup %1474  ;;  %1488 = vrsqrt.f32 %v943_v41 }
 0x155   :  { %v1477_v23 = vpop.eup %1476  ;;  %v1020_v30 = vmul.f32 %v1475_v20, %v1748_v33  ;;  %v921_v33 = vpop.xlane.xlu0 %920 }
 0x156   :  { %1363 = vmatprep.subr.bf16.mxu0 %v1041_v7  ;;  %v1033_v27 = vpack.c.bf16 %v1003_v11, %v1002_v8  ;;  %v1021_v24 = vmul.f32 %v1477_v23, %v1750_v34  ;;  %v1479_v28 = vpop.eup %1478  ;;  %v960_v52 = vmax.f32 %v921_v33, 1e-24  ;;  %v963_v11 = vmax.f32 %v927_v15, 1e-24 }
 0x157   :  { %v1481_v42 = vpop.eup %1480  ;;  %v1004_v45 = vmul.f32 %v1479_v28, %v1756_v38 }
 0x158   :  { %v1042_v29 = vpack.c.bf16 %v1021_v24, %v1020_v30  ;;  %v1005_v50 = vmul.f32 %v1481_v42, %v1758_v39  ;;  %1490 = vrsqrt.f32 %v960_v52  ;;  %v855_v24 = vmul.f32 %v1864_v13, %v1864_v13 }
 0x159   :  { %1492 = vrsqrt.f32 %v961_v53  ;;  %v889_v58 = vpop.xlane.xlu0 %888 }
 0x15a   :  { %1364 = vmatpush3.bf16.xpose.msra.mxu0 %v1033_v27  ;;  %v1034_v34 = vpack.c.bf16 %v1005_v50, %v1004_v45  ;;  %v1483_v60 = vpop.eup %1482  ;;  %v944_v40 = vmax.f32 %v889_v58, 1e-24 }
 0x15b   :  { %1365 = vmatprep.subr.bf16.mxu0 %v1042_v29  ;;  %v1485_v62 = vpop.eup %1484  ;;  %v1022_v38 = vmul.f32 %v1483_v60, %v1764_v43 }
 0x15c   :  { %1494 = vrsqrt.f32 %v944_v40  ;;  %v1023_v39 = vmul.f32 %v1485_v62, %v1766_v44 }
 0x15d   :  { %1496 = vrsqrt.f32 %v945_v61  ;;  %v925_v2 = vpop.xlane.xlu0 %924  ;;  %v1487_v47 = vpop.eup %1486 }
 0x15e   :  { %v962_v16 = vmax.f32 %v925_v2, 1e-24  ;;  %v1043_v7 = vpack.c.bf16 %v1023_v39, %v1022_v38  ;;  %v1489_v17 = vpop.eup %1488  ;;  %v1006_v12 = vmul.f32 %v1487_v47, %v1772_v48  ;;  %v895_v48 = vpop.xlane.xlu1 %894 }
 0x15f   :  { %v1007_v44 = vmul.f32 %v1489_v17, %v1774_v49  ;;  %v947_v30 = vmax.f32 %v895_v48, 1e-24 }
 0x160   :  { %1498 = vrsqrt.f32 %v962_v16 }
 0x161   :  { %1500 = vrsqrt.f32 %v963_v11  ;;  %v893_v20 = vpop.xlane.xlu0 %892  ;;  %v1035_v23 = vpack.c.bf16 %v1007_v44, %v1006_v12 }
 0x162   :  { %1366 = vmatpush3.bf16.xpose.msra.mxu0 %v1034_v34  ;;  %v1491_v21 = vpop.eup %1490  ;;  %v946_v27 = vmax.f32 %v893_v20, 1e-24  ;;  %v931_v37 = vpop.xlane.xlu1 %930 }
 0x163   :  { %1367 = vmatprep.subr.bf16.mxu0 %v1043_v7  ;;  %v1024_v31 = vmul.f32 %v1491_v21, %v1780_v54  ;;  %v965_v42 = vmax.f32 %v931_v37, 1e-24 }
 0x164   :  { %1502 = vrsqrt.f32 %v946_v27 }
 0x165   :  { %1504 = vrsqrt.f32 %v947_v30  ;;  %v929_v35 = vpop.xlane.xlu0 %928 }
 0x166   :  { %v964_v28 = vmax.f32 %v929_v35, 1e-24 }
 0x168   :  { %1506 = vrsqrt.f32 %v964_v28 }
 0x169   :  { %1508 = vrsqrt.f32 %v965_v42  ;;  %v897_v50 = vpop.xlane.xlu0 %896 }
 0x16a   :  { %1368 = vmatpush3.bf16.xpose.msra.mxu0 %v1035_v23  ;;  %v948_v51 = vmax.f32 %v897_v50, 1e-24 }
 0x16b   :  { %v1355_v1 = vpop.f32.mrb[8].mxu1 }
 0x16c   :  { %v1356_v14 = vpop.f32.mrb[9].mxu1  ;;  %1510 = vrsqrt.f32 %v948_v51 }
 0x16d   :  { %v1357_v3 = vadd.f32 %v1356_v14, %v1355_v1  ;;  %v1358_v6 = vpop.f32.mrb[10].mxu1 }
 0x16e   :  { %v1359_v8 = vpop.f32.mrb[11].mxu1 }
 0x16f   :  { %v1861_v43 = vadd.f32 %v1357_v3, %v1844_v46  ;;  %v1493_v46 = vpop.eup %1492 }
 0x170   :  { %v1025_v49 = vmul.f32 %v1493_v46, %v1782_v55  ;;  %v1495_v36 = vpop.eup %1494  ;;  %v899_v55 = vpop.xlane.xlu1 %898 }
 0x171   :  { %766 = vst [vmem:[#allocation9] sm:$0xff] %v1861_v43  ;;  %v767_v22 = vmul.f32 %v1861_v43, %v1861_v43  ;;  %v1497_v29 = vpop.eup %1496  ;;  %v1008_v45 = vmul.f32 %v1495_v36, %v1784_v56  ;;  %v949_v34 = vmax.f32 %v899_v55, 1e-24  ;;  %v935_v56 = vpop.xlane.xlu0 %934 }
 0x172   :  { %v1044_v41 = vpack.c.bf16 %v1025_v49, %v1024_v31  ;;  %v1009_v54 = vmul.f32 %v1497_v29, %v1786_v57  ;;  %v1499_v33 = vpop.eup %1498  ;;  %v967_v40 = vmax.f32 %v935_v56, 1e-24 }
 0x173   :  { %768 = vadd.xlane.f32.xlu0 %v767_v22  ;;  %v1501_v53 = vpop.eup %1500  ;;  %v1026_v58 = vmul.f32 %v1499_v33, %v1796_v63  ;;  %1512 = vrsqrt.f32 %v949_v34  ;;  %v770_v22 = vmul.f32 10.0, %v1861_v43 }
 0x174   :  { %1369 = vmatprep.subr.bf16.mxu0 %v1044_v41  ;;  %v1036_v52 = vpack.c.bf16 %v1009_v54, %v1008_v45  ;;  %v1027_v59 = vmul.f32 %v1501_v53, %v1798_v0  ;;  %v1503_v60 = vpop.eup %1502  ;;  %v933_v61 = vpop.xlane.xlu1 %932  ;;  %1514 = vrsqrt.f32 %v967_v40 }
 0x175   :  { %v1505_v62 = vpop.eup %1504  ;;  %v966_v38 = vmax.f32 %v933_v61, 1e-24  ;;  %v1010_v1 = vmul.f32 %v1503_v60, %v1804_v4 }
 0x176   :  { %1370 = vmatpush3.bf16.xpose.msra.mxu0 %v1036_v52  ;;  %v1045_v57 = vpack.c.bf16 %v1027_v59, %v1026_v58  ;;  %v1011_v39 = vmul.f32 %v1505_v62, %v1806_v5  ;;  %v1507_v63 = vpop.eup %1506 }
 0x177   :  { %902 = vadd.xlane.f32.xlu0 %v855_v24  ;;  %1516 = vrsqrt.f32 %v966_v38  ;;  %v1509_v2 = vpop.eup %1508  ;;  %v1028_v0 = vmul.f32 %v1507_v63, %v1812_v9 }
 0x178   :  { %1371 = vmatprep.subr.bf16.mxu0 %v1045_v57  ;;  %v1037_v14 = vpack.c.bf16 %v1011_v39, %v1010_v1  ;;  %v1029_v47 = vmul.f32 %v1509_v2, %v1814_v10  ;;  %v1511_v3 = vpop.eup %1510  ;;  %v901_v12 = vpop.xlane.xlu1 %900 }
 0x179   :  { %v1012_v15 = vmul.f32 %v1511_v3, %v1820_v18  ;;  %v950_v10 = vmax.f32 %v901_v12, 1e-24 }
 0x17a   :  { %v1046_v6 = vpack.c.bf16 %v1029_v47, %v1028_v0 }
 0x17b   :  { %1518 = vrsqrt.f32 %v950_v10 }
 0x17d   :  { %v1513_v16 = vpop.eup %1512 }
 0x17e   :  { %1372 = vmatpush3.bf16.xpose.msra.mxu0 %v1037_v14  ;;  %v1013_v4 = vmul.f32 %v1513_v16, %v1822_v19  ;;  %v1515_v7 = vpop.eup %1514 }
 0x17f   :  { %1373 = vmatprep.subr.bf16.mxu0 %v1046_v6  ;;  %v1031_v8 = vmul.f32 %v1515_v7, %v1828_v25 }
 0x180   :  { %v1038_v17 = vpack.c.bf16 %v1013_v4, %v1012_v15 }
 0x181   :  { %v1517_v5 = vpop.eup %1516 }
 0x182   :  { %v1030_v11 = vmul.f32 %v1517_v5, %v1830_v26 }
 0x184   :  { %v1047_v9 = vpack.c.bf16 %v1031_v8, %v1030_v11 }
 0x185   :  { %v1519_v19 = vpop.eup %1518 }
 0x186   :  { %1374 = vmatpush3.bf16.xpose.msra.mxu0 %v1038_v17  ;;  %v1014_v23 = vmul.f32 %v1519_v19, %v1839_v32 }
 0x187   :  { %1375 = vmatprep.subr.bf16.mxu0 %v1047_v9 }
 0x200   :  { %v769_v44 = vpop.xlane.xlu0 %768 }
 0x201   :  { %v771_v20 = vmax.f32 %v769_v44, 1e-24 }
 0x203   :  { %1520 = vrsqrt.f32 %v771_v20 }
 0x204   :  { %v903_v18 = vpop.xlane.xlu0 %902 }
 0x205   :  { %v951_v21 = vmax.f32 %v903_v18, 1e-24 }
 0x207   :  { %1522 = vrsqrt.f32 %v951_v21 }
 0x20d   :  { %v1521_v27 = vpop.eup %1520 }
 0x20e   :  { %v773_v48 = vmul.f32 %v1521_v27, %v770_v22 }
 0x210   :  { %v774_v25 = vpack.c.bf16 %v773_v48, %v773_v48 }
 0x211   :  { %v1523_v26 = vpop.eup %1522 }
 0x212   :  { %775 = vst [vmem:[#allocation2] sm:$0xf] %v774_v25  ;;  %v1015_v46 = vmul.f32 %v1523_v26, %v1864_v13 }
 0x214   :  { %v1039_v30 = vpack.c.bf16 %v1015_v46, %v1014_v23 }
 0x216   :  { %1376 = vmatpush3.bf16.xpose.msra.mxu0 %v1039_v30 }
 0x219   :  { %v1048_v31 = vld [vmem:[#allocation2] sm:$0xf] }
 0x21a   :  { %1377 = vmatprep.mubr.bf16.mxu0 %v1048_v31 }
 0x21d   :  { %1378 = vmatmul.mubr.bf16.vlgmr.msra.gmra.mrb[4].mxu0 %v1048_v31 }
 0x21e   :  { %1601 = shalt.err (!%p1598_p0)
}
 0x21f   :  { %s1602_s29 = scalar_lea.hbm %s1916_s3, 128 }
 0x220   :  { %p1603_p1 = scmp.ne.s32.totalorder %s1916_s3, %s1602_s29  ;;  %p1606_p2 = scmp.lt.u32.totalorder %s1602_s29, %s1916_s3 }
 0x222   :  { %p1608_p3 = pnand %p1606_p2, %p1603_p1 }
 0x224   :  { %1611 = shalt.err (!%p1608_p3)
}
 0x225   :  { %1101 = dma.vmem_to_hbm [thread:$0]  %s1099_s25, 128, %s1916_s3, [#allocation5]  }
 0x226   :  { %s1648_s10 = smov [#allocation10]  }
 0x227   :  { %s1108_s11 = sshll.u32 %s1648_s10, 4  ;;  %s1109_s11 = int_to_ptr.vmem [resolvable:$true] %s1108_s11 }
 0x228   :  { %s1612_s12 = scalar_lea.vmem %s1109_s11, 256  ;;  %p1617_p5 = scmp.lt.s32.totalorder %s1109_s11, %s1109_s11 }
 0x229   :  { %p1613_p4 = scmp.ne.s32.totalorder %s1109_s11, %s1612_s12  ;;  %p1618_p6 = scmp.lt.s32.totalorder %s1612_s12, %s1612_s12 }
 0x22b   :  { %p1619_p7 = por %p1618_p6, %p1617_p5 }
 0x22d   :  { %p1620_p8 = pnand %p1619_p7, %p1613_p4 }
 0x2f0   :  { %v1083_v32 = vpop.f32.mrb[4].mxu0 }
 0x2f1   :  { %1090 = vst [vmem:[#allocation10] sm:$0xff] %v1083_v32  ;;  %v1085_v43 = vpop.f32.mrb[5].mxu0 }
 0x2f2   :  { %1091 = vst [vmem:[#allocation10 + $0x8] sm:$0xff] %v1085_v43  ;;  %v1087_v13 = vpop.f32.mrb[6].mxu0 }
 0x2f3   :  { %v1088_v24 = vpop.f32.mrb[7].mxu0 }
 0x2f4   :  { %1623 = shalt.err (!%p1620_p8)
}
 0x2f5   :  { %s1624_s3 = scalar_lea.hbm %s1917_s4, 256 }
 0x2f6   :  { %p1625_p9 = scmp.ne.s32.totalorder %s1917_s4, %s1624_s3  ;;  %p1628_p10 = scmp.lt.u32.totalorder %s1624_s3, %s1917_s4 }
 0x2f8   :  { %p1630_p11 = pnand %p1628_p10, %p1625_p9 }
 0x2fa   :  { %1633 = shalt.err (!%p1630_p11)
}
 0x2fb   :  { %1111 = dma.vmem_to_hbm [thread:$0]  %s1109_s11, 256, %s1917_s4, [#allocation11]  }
 0x2fc   :  { %1638 = dma.done.wait [#allocation5], 128  }
 0x2fd   :  { %1639 = vsyncadd [#allocation5], 4294967168 }
 0x2fe   :  { %1640 = dma.done.wait [#allocation11], 256  }
 0x2ff   :  { %1641 = vsyncadd [#allocation11], 4294967040 }
 0x300   :  { %1118 = vsyncpa [#allocation4], 1 }
 0x301   :  { %1119 = vsyncpa [#allocation7], 1 }
 0x302   :  { %1120 = vsyncpa [#allocation5], 1 }
 0x303   :  { %1121 = vsyncpa [#allocation11], 1 }

// kernel: tpu_custom_call.1
= control target key start
LH: loop header
LB: loop body
LE: loop exit
PB: predicated region body
PF: predicated region fallthrough
CT: control target
= control target key end

     0   :  { %10 = vsyncpa [#allocation4], 0  ;;  %s1913_s0 = inlined_call_operand.hbm [shape: bf16[8,1024], index: 0, kind: input, shape index: {}]   ;;  %s1914_s1 = inlined_call_operand.hbm [shape: bf16[1024,128], index: 1, kind: input, shape index: {}]   ;;  %s1915_s2 = inlined_call_operand.hbm [shape: bf16[256,128], index: 2, kind: input, shape index: {}]   ;;  %s1916_s3 = inlined_call_operand.hbm [shape: f32[8,128], index: 3, kind: output, shape index: {0}]   ;;  %s1917_s4 = inlined_call_operand.hbm [shape: f32[8,256], index: 4, kind: output, shape index: {1}]  }
   0x1   :  { %11 = vsyncpa [#allocation7], 0 }
   0x2   :  { %12 = vsyncpa [#allocation5], 0 }
   0x3   :  { %13 = vsyncpa [#allocation11], 0  ;;  %s1642_s15 = smov [#allocation6]   ;;  %s1524_s19 = scalar_lea.hbm %s1914_s1, 8192 }
   0x4   :  { %s29_s16 = sshll.u32 %s1642_s15, 4  ;;  %p1525_p0 = scmp.ne.s32.totalorder %s1914_s1, %s1524_s19  ;;  %s30_s16 = int_to_ptr.vmem [resolvable:$true] %s29_s16 }
   0x5   :  { %p1528_p1 = scmp.lt.u32.totalorder %s1524_s19, %s1914_s1 }
   0x7   :  { %p1530_p2 = pnand %p1528_p1, %p1525_p0 }
   0x9   :  { %1533 = shalt.err (!%p1530_p2)
}
   0xa   :  { %s1534_s24 = scalar_lea.vmem %s30_s16, 8192  ;;  %p1539_p4 = scmp.lt.s32.totalorder %s30_s16, %s30_s16 }
   0xb   :  { %p1535_p3 = scmp.ne.s32.totalorder %s30_s16, %s1534_s24  ;;  %p1540_p5 = scmp.lt.s32.totalorder %s1534_s24, %s1534_s24 }
   0xd   :  { %p1541_p6 = por %p1540_p5, %p1539_p4 }
   0xf   :  { %p1542_p7 = pnand %p1541_p6, %p1535_p3 }
  0x11   :  { %1545 = shalt.err (!%p1542_p7)
}
  0x12   :  { %s1643_s25 = smov 64   ;;  %s1644_s26 = smov 4  }
  0x13   :  { %35 = dma.hbm_to_vmem [thread:$0]  %s1914_s1, 8192, %s30_s16, [#allocation7], %s1643_s25, %s1643_s25, %s1644_s26  }
  0x14   :  { %s1645_s29 = smov [#allocation3]   ;;  %s1646_s5 = smov [#allocation8]  }
  0x15   :  { %s20_s30 = sshll.u32 %s1645_s29, 4  ;;  %s41_s6 = sshll.u32 %s1646_s5, 4  ;;  %s21_s30 = int_to_ptr.vmem [resolvable:$true] %s20_s30  ;;  %s42_s6 = int_to_ptr.vmem [resolvable:$true] %s41_s6 }
  0x16   :  { %s1546_s9 = scalar_lea.hbm %s1913_s0, 512 }
  0x17   :  { %p1547_p8 = scmp.ne.s32.totalorder %s1913_s0, %s1546_s9  ;;  %p1550_p9 = scmp.lt.u32.totalorder %s1546_s9, %s1913_s0 }
  0x19   :  { %p1552_p10 = pnand %p1550_p9, %p1547_p8 }
  0x1b   :  { %1555 = shalt.err (!%p1552_p10)
}
  0x1c   :  { %s1556_s1 = scalar_lea.vmem %s21_s30, 512  ;;  %p1561_p12 = scmp.lt.s32.totalorder %s21_s30, %s21_s30 }
  0x1d   :  { %p1557_p11 = scmp.ne.s32.totalorder %s21_s30, %s1556_s1  ;;  %p1562_p13 = scmp.lt.s32.totalorder %s1556_s1, %s1556_s1 }
  0x1f   :  { %p1563_p0 = por %p1562_p13, %p1561_p12 }
  0x21   :  { %p1564_p1 = pnand %p1563_p0, %p1557_p11 }
  0x23   :  { %1567 = shalt.err (!%p1564_p1)
}
  0x24   :  { %23 = dma.hbm_to_vmem [thread:$0]  %s1913_s0, 512, %s21_s30, [#allocation4]  }
  0x25   :  { %s1568_s18 = scalar_lea.hbm %s1915_s2, 2048 }
  0x26   :  { %p1569_p2 = scmp.ne.s32.totalorder %s1915_s2, %s1568_s18  ;;  %p1572_p3 = scmp.lt.u32.totalorder %s1568_s18, %s1915_s2 }
  0x28   :  { %p1574_p4 = pnand %p1572_p3, %p1569_p2 }
  0x2a   :  { %1577 = shalt.err (!%p1574_p4)
}
  0x2b   :  { %s1578_s23 = scalar_lea.vmem %s42_s6, 2048  ;;  %p1583_p6 = scmp.lt.s32.totalorder %s42_s6, %s42_s6 }
  0x2c   :  { %p1579_p5 = scmp.ne.s32.totalorder %s42_s6, %s1578_s23  ;;  %p1584_p7 = scmp.lt.s32.totalorder %s1578_s23, %s1578_s23 }
  0x2e   :  { %p1585_p8 = por %p1584_p7, %p1583_p6 }
  0x30   :  { %p1586_p9 = pnand %p1585_p8, %p1579_p5 }
  0x32   :  { %1589 = shalt.err (!%p1586_p9)
}
  0x33   :  { %47 = dma.hbm_to_vmem [thread:$0]  %s1915_s2, 2048, %s42_s6, [#allocation7], %s1643_s25, %s1643_s25, %s1644_s26  }
  0x34   :  { %1634 = dma.done.wait [#allocation4], 512  }
  0x35   :  { %1635 = vsyncadd [#allocation4], 4294966784 }
  0x36   :  { %1636 = dma.done.wait [#allocation7], 10240  }
  0x37   :  { %1637 = vsyncadd [#allocation7], 4294957056  ;;  %v1386_v0 = vld [vmem:[#allocation6 + $0x40] sm:$0xff]   ;;  %v1388_v2 = vld [vmem:[#allocation6 + $0x48] sm:$0xff]   ;;  %s1647_s2 = smov [#allocation9]  }
  0x38   :  { %v1387_v1 = vld [vmem:[#allocation6] sm:$0xff]   ;;  %1273 = vmatprep.subr.bf16.mxu1 %v1386_v0  ;;  %v1389_v3 = vld [vmem:[#allocation6 + $0x8] sm:$0xff]   ;;  %v1390_v4 = vld [vmem:[#allocation6 + $0x50] sm:$0xff]   ;;  %s1098_s25 = sshll.u32 %s1647_s2, 4  ;;  %s1099_s25 = int_to_ptr.vmem [resolvable:$true] %s1098_s25 }
  0x39   :  { %1274 = vmatpush3.bf16.msra.mxu1 %v1387_v1  ;;  %v1391_v5 = vld [vmem:[#allocation6 + $0x10] sm:$0xff]   ;;  %v1392_v6 = vld [vmem:[#allocation6 + $0x58] sm:$0xff]   ;;  %v1394_v8 = vld [vmem:[#allocation6 + $0x60] sm:$0xff]   ;;  %s1590_s26 = scalar_lea.vmem %s1099_s25, 128  ;;  %p1595_p11 = scmp.lt.s32.totalorder %s1099_s25, %s1099_s25 }
  0x3a   :  { %1275 = vmatprep.subr.bf16.mxu1 %v1388_v2  ;;  %v1393_v7 = vld [vmem:[#allocation6 + $0x18] sm:$0xff]   ;;  %v1395_v9 = vld [vmem:[#allocation6 + $0x20] sm:$0xff]   ;;  %v1396_v10 = vld [vmem:[#allocation6 + $0x68] sm:$0xff]   ;;  %p1591_p10 = scmp.ne.s32.totalorder %s1099_s25, %s1590_s26  ;;  %p1596_p12 = scmp.lt.s32.totalorder %s1590_s26, %s1590_s26 }
  0x3b   :  { %v62_v11 = vld [vmem:[#allocation3] sm:$0xff]  ;;  %v1397_v12 = vld [vmem:[#allocation6 + $0x28] sm:$0xff]   ;;  %v1398_v14 = vld [vmem:[#allocation6 + $0x70] sm:$0xff]  }
  0x3c   :  { %v1123_v13 = vcombine.high %v62_v11, %v62_v11  ;;  %v1406_v15 = vld [vmem:[#allocation6 + $0x140] sm:$0xff]   ;;  %v1399_v17 = vld [vmem:[#allocation6 + $0x30] sm:$0xff]   ;;  %v1400_v18 = vld [vmem:[#allocation6 + $0x78] sm:$0xff]   ;;  %v1122_v26 = vcombine.low %v62_v11, %v62_v11  ;;  %p1597_p13 = por %p1596_p12, %p1595_p11 }
  0x3d   :  { %1276 = vmatpush3.bf16.msra.mxu1 %v1389_v3  ;;  %v1407_v16 = vld [vmem:[#allocation6 + $0x100] sm:$0xff]   ;;  %1317 = vmatprep.subr.bf16.mxu0 %v1406_v15  ;;  %v1410_v19 = vld [vmem:[#allocation6 + $0x148] sm:$0xff]   ;;  %v1401_v21 = vld [vmem:[#allocation6 + $0x38] sm:$0xff]  }
  0x3e   :  { %1277 = vmatprep.subr.bf16.mxu1 %v1390_v4  ;;  %638 = vmatprep.mubr.bf16.mxu1 %v1123_v13  ;;  %v1411_v20 = vld [vmem:[#allocation6 + $0x108] sm:$0xff]   ;;  %v1404_v22 = vld [vmem:[#allocation6 + $0xc0] sm:$0xff]   ;;  %v1414_v23 = vld [vmem:[#allocation6 + $0x150] sm:$0xff]   ;;  %p1598_p0 = pnand %p1597_p13, %p1591_p10 }
  0x3f   :  { %1318 = vmatpush3.bf16.msra.mxu0 %v1407_v16  ;;  %v1415_v24 = vld [vmem:[#allocation6 + $0x110] sm:$0xff]   ;;  %v1405_v25 = vld [vmem:[#allocation6 + $0x80] sm:$0xff]   ;;  %v1408_v27 = vld [vmem:[#allocation6 + $0xc8] sm:$0xff]  }
  0x40   :  { %1319 = vmatprep.subr.bf16.mxu0 %v1410_v19  ;;  %v1418_v28 = vld [vmem:[#allocation6 + $0x158] sm:$0xff]   ;;  %v1409_v30 = vld [vmem:[#allocation6 + $0x88] sm:$0xff]   ;;  %v1412_v31 = vld [vmem:[#allocation6 + $0xd0] sm:$0xff]  }
  0x41   :  { %1278 = vmatpush3.bf16.msra.mxu1 %v1391_v5  ;;  %v1419_v29 = vld [vmem:[#allocation6 + $0x118] sm:$0xff]   ;;  %v1422_v32 = vld [vmem:[#allocation6 + $0x160] sm:$0xff]   ;;  %v1413_v34 = vld [vmem:[#allocation6 + $0x90] sm:$0xff]  }
  0x42   :  { %1279 = vmatprep.subr.bf16.mxu1 %v1392_v6  ;;  %v1423_v33 = vld [vmem:[#allocation6 + $0x120] sm:$0xff]   ;;  %v1416_v35 = vld [vmem:[#allocation6 + $0xd8] sm:$0xff]   ;;  %v1426_v36 = vld [vmem:[#allocation6 + $0x168] sm:$0xff]  }
  0x43   :  { %1320 = vmatpush3.bf16.msra.mxu0 %v1411_v20  ;;  %v1427_v37 = vld [vmem:[#allocation6 + $0x128] sm:$0xff]   ;;  %v1417_v38 = vld [vmem:[#allocation6 + $0x98] sm:$0xff]   ;;  %v1420_v39 = vld [vmem:[#allocation6 + $0xe0] sm:$0xff]  }
  0x44   :  { %1321 = vmatprep.subr.bf16.mxu0 %v1414_v23  ;;  %v1430_v40 = vld [vmem:[#allocation6 + $0x170] sm:$0xff]   ;;  %v1421_v42 = vld [vmem:[#allocation6 + $0xa0] sm:$0xff]   ;;  %v1424_v43 = vld [vmem:[#allocation6 + $0xe8] sm:$0xff]  }
  0x45   :  { %1280 = vmatpush3.bf16.msra.mxu1 %v1393_v7  ;;  %v1431_v41 = vld [vmem:[#allocation6 + $0x130] sm:$0xff]   ;;  %v1434_v44 = vld [vmem:[#allocation6 + $0x178] sm:$0xff]   ;;  %v63_v45 = vld [vmem:[#allocation3 + $0x8] sm:$0xff] }
  0x46   :  { %1281 = vmatprep.subr.bf16.mxu1 %v1394_v8  ;;  %v1125_v46 = vcombine.high %v63_v45, %v63_v45  ;;  %v1437_v47 = vld [vmem:[#allocation6 + $0x138] sm:$0xff]   ;;  %v64_v48 = vld [vmem:[#allocation3 + $0x10] sm:$0xff]  ;;  %v1425_v51 = vld [vmem:[#allocation6 + $0xa8] sm:$0xff]   ;;  %v1124_v57 = vcombine.low %v63_v45, %v63_v45 }
  0x47   :  { %1322 = vmatpush3.bf16.msra.mxu0 %v1415_v24  ;;  %v1126_v49 = vcombine.low %v64_v48, %v64_v48  ;;  %v1127_v50 = vcombine.high %v64_v48, %v64_v48  ;;  %v1428_v52 = vld [vmem:[#allocation6 + $0xf0] sm:$0xff]   ;;  %v1432_v54 = vld [vmem:[#allocation6 + $0xf8] sm:$0xff]   ;;  %v1438_v56 = vld [vmem:[#allocation6 + $0x1c0] sm:$0xff]  }
  0x48   :  { %1323 = vmatprep.subr.bf16.mxu0 %v1418_v28  ;;  %v1429_v53 = vld [vmem:[#allocation6 + $0xb0] sm:$0xff]   ;;  %v1433_v55 = vld [vmem:[#allocation6 + $0xb8] sm:$0xff]   ;;  %v1441_v58 = vld [vmem:[#allocation6 + $0x180] sm:$0xff]  }
  0x49   :  { %1282 = vmatpush3.bf16.msra.mxu1 %v1395_v9  ;;  %718 = vmatprep.mubr.bf16.mxu0 %v1127_v50  ;;  %v1442_v59 = vld [vmem:[#allocation6 + $0x1c8] sm:$0xff]   ;;  %v65_v60 = vld [vmem:[#allocation3 + $0x18] sm:$0xff]  ;;  %v1444_v63 = vld [vmem:[#allocation6 + $0x1d0] sm:$0xff]  }
  0x4a   :  { %1283 = vmatprep.subr.bf16.mxu1 %v1396_v10  ;;  %v1129_v61 = vcombine.high %v65_v60, %v65_v60  ;;  %v1443_v62 = vld [vmem:[#allocation6 + $0x188] sm:$0xff]   ;;  %v1445_v0 = vld [vmem:[#allocation6 + $0x190] sm:$0xff]   ;;  %v1446_v1 = vld [vmem:[#allocation6 + $0x1d8] sm:$0xff]   ;;  %v1128_v11 = vcombine.low %v65_v60, %v65_v60 }
  0x4b   :  { %1324 = vmatpush3.bf16.msra.mxu0 %v1419_v29  ;;  %v1447_v2 = vld [vmem:[#allocation6 + $0x198] sm:$0xff]   ;;  %v1448_v3 = vld [vmem:[#allocation6 + $0x1e0] sm:$0xff]   ;;  %v1450_v5 = vld [vmem:[#allocation6 + $0x1e8] sm:$0xff]  }
  0x4c   :  { %1325 = vmatprep.subr.bf16.mxu0 %v1422_v32  ;;  %v1449_v4 = vld [vmem:[#allocation6 + $0x1a0] sm:$0xff]   ;;  %v1451_v6 = vld [vmem:[#allocation6 + $0x1a8] sm:$0xff]   ;;  %v1452_v7 = vld [vmem:[#allocation6 + $0x1f0] sm:$0xff]  }
  0x4d   :  { %1284 = vmatpush3.bf16.msra.mxu1 %v1397_v12  ;;  %v1453_v8 = vld [vmem:[#allocation6 + $0x1b0] sm:$0xff]   ;;  %v1454_v9 = vld [vmem:[#allocation6 + $0x1f8] sm:$0xff]   ;;  %v1265_v12 = vld [vmem:[#allocation8 + $0x40] sm:$0xff]  }
  0x4e   :  { %1285 = vmatprep.subr.bf16.mxu1 %v1398_v14  ;;  %v1455_v10 = vld [vmem:[#allocation6 + $0x1b8] sm:$0xff]   ;;  %v1195_v13 = vld [vmem:[#allocation8] sm:$0xff]   ;;  %v1716_v14 = vunpack.c.l.bf16 %v1265_v12  ;;  %v1718_v15 = vunpack.c.h.bf16 %v1265_v12  ;;  %v1270_v60 = vld [vmem:[#allocation8 + $0x68] sm:$0xff]  }
  0x4f   :  { %1326 = vmatpush3.bf16.msra.mxu0 %v1423_v33  ;;  %v1720_v16 = vunpack.c.l.bf16 %v1195_v13 }
  0x50   :  { %1327 = vmatprep.subr.bf16.mxu0 %v1426_v36  ;;  %v856_v19 = vmul.f32 %v1716_v14, %v1716_v14 }
  0x51   :  { %1286 = vmatpush3.bf16.msra.mxu1 %v1399_v17  ;;  %v1722_v17 = vunpack.c.h.bf16 %v1195_v13  ;;  %v840_v20 = vmul.f32 %v1720_v16, %v1720_v16 }
  0x52   :  { %1287 = vmatprep.subr.bf16.mxu1 %v1400_v18  ;;  %v1266_v18 = vld [vmem:[#allocation8 + $0x48] sm:$0xff]   ;;  %904 = vadd.xlane.f32.xlu0 %v856_v19 }
  0x53   :  { %1328 = vmatpush3.bf16.msra.mxu0 %v1427_v37  ;;  %872 = vadd.xlane.f32.xlu1 %v840_v20  ;;  %v1732_v23 = vunpack.c.l.bf16 %v1266_v18  ;;  %v1734_v24 = vunpack.c.h.bf16 %v1266_v18 }
  0x54   :  { %1329 = vmatprep.subr.bf16.mxu0 %v1430_v40 }
  0x55   :  { %1288 = vmatpush3.bf16.msra.mxu1 %v1401_v21  ;;  %v857_v21 = vmul.f32 %v1718_v15, %v1718_v15 }
  0x56   :  { %1295 = vmatprep.subr.bf16.mxu1 %v1404_v22  ;;  %v841_v22 = vmul.f32 %v1722_v17, %v1722_v17 }
  0x57   :  { %1330 = vmatpush3.bf16.msra.mxu0 %v1431_v41  ;;  %906 = vadd.xlane.f32.xlu0 %v857_v21 }
  0x58   :  { %639 = vmatmul.mubr.bf16.vlgmr.msra.gmra.mrb[0].mxu1 %v1122_v26  ;;  %1331 = vmatprep.subr.bf16.mxu0 %v1434_v44  ;;  %v858_v26 = vmul.f32 %v1732_v23, %v1732_v23 }
  0x59   :  { %1296 = vmatpush3.bf16.msra.mxu1 %v1405_v25  ;;  %678 = vmatprep.mubr.bf16.mxu1 %v1125_v46  ;;  %v1258_v25 = vld [vmem:[#allocation8 + $0x8] sm:$0xff]  }
  0x5a   :  { %1297 = vmatprep.subr.bf16.mxu1 %v1408_v27  ;;  %874 = vadd.xlane.f32.xlu1 %v841_v22  ;;  %v859_v27 = vmul.f32 %v1734_v24, %v1734_v24  ;;  %v1740_v28 = vunpack.c.l.bf16 %v1258_v25  ;;  %v1742_v29 = vunpack.c.h.bf16 %v1258_v25  ;;  %v1272_v22 = vld [vmem:[#allocation8 + $0x78] sm:$0xff]  }
  0x5b   :  { %1332 = vmatpush3.bf16.msra.mxu0 %v1437_v47  ;;  %908 = vadd.xlane.f32.xlu0 %v858_v26  ;;  %v1260_v47 = vld [vmem:[#allocation8 + $0x18] sm:$0xff]   ;;  %v1828_v25 = vunpack.c.h.bf16 %v1272_v22  ;;  %v1830_v26 = vunpack.c.l.bf16 %v1272_v22 }
  0x5c   :  { %v843_v32 = vmul.f32 %v1742_v29, %v1742_v29  ;;  %v1772_v48 = vunpack.c.l.bf16 %v1260_v47 }
  0x5d   :  { %1298 = vmatpush3.bf16.msra.mxu1 %v1409_v30  ;;  %v1267_v30 = vld [vmem:[#allocation8 + $0x50] sm:$0xff]  }
  0x5e   :  { %1299 = vmatprep.subr.bf16.mxu1 %v1412_v31  ;;  %719 = vmatmul.mubr.bf16.vlgmr.msra.gmra.mrb[0].mxu0 %v1126_v49  ;;  %v842_v31 = vmul.f32 %v1740_v28, %v1740_v28  ;;  %v1748_v33 = vunpack.c.l.bf16 %v1267_v30  ;;  %v1774_v49 = vunpack.c.h.bf16 %v1260_v47  ;;  %v846_v50 = vmul.f32 %v1772_v48, %v1772_v48 }
  0x5f   :  { %910 = vadd.xlane.f32.xlu1 %v859_v27  ;;  %v871_v27 = vmul.f32 %v1828_v25, %v1828_v25 }
  0x60   :  { %876 = vadd.xlane.f32.xlu0 %v842_v31  ;;  %v860_v36 = vmul.f32 %v1748_v33, %v1748_v33  ;;  %v1836_v31 = vld [vmem:[#allocation8 + $0x38] sm:$0xff]  }
  0x61   :  { %1300 = vmatpush3.bf16.msra.mxu1 %v1413_v34  ;;  %v1750_v34 = vunpack.c.h.bf16 %v1267_v30  ;;  %v870_v30 = vmul.f32 %v1830_v26, %v1830_v26 }
  0x62   :  { %1301 = vmatprep.subr.bf16.mxu1 %v1416_v35  ;;  %v1259_v35 = vld [vmem:[#allocation8 + $0x10] sm:$0xff]  }
  0x63   :  { %878 = vadd.xlane.f32.xlu1 %v843_v32  ;;  %v861_v37 = vmul.f32 %v1750_v34, %v1750_v34  ;;  %v1839_v32 = vunpack.c.l.bf16 %v1836_v31 }
  0x64   :  { %912 = vadd.xlane.f32.xlu0 %v860_v36 }
  0x65   :  { %1302 = vmatpush3.bf16.msra.mxu1 %v1417_v38  ;;  %v1756_v38 = vunpack.c.l.bf16 %v1259_v35 }
  0x66   :  { %1303 = vmatprep.subr.bf16.mxu1 %v1420_v39  ;;  %v1758_v39 = vunpack.c.h.bf16 %v1259_v35  ;;  %v854_v35 = vmul.f32 %v1839_v32, %v1839_v32 }
  0x67   :  { %914 = vadd.xlane.f32.xlu1 %v861_v37  ;;  %v844_v40 = vmul.f32 %v1756_v38, %v1756_v38 }
  0x68   :  { %v845_v41 = vmul.f32 %v1758_v39, %v1758_v39 }
  0x69   :  { %1304 = vmatpush3.bf16.msra.mxu1 %v1421_v42  ;;  %880 = vadd.xlane.f32.xlu0 %v844_v40  ;;  %v1268_v42 = vld [vmem:[#allocation8 + $0x58] sm:$0xff]  }
  0x6a   :  { %1305 = vmatprep.subr.bf16.mxu1 %v1424_v43  ;;  %v1764_v43 = vunpack.c.l.bf16 %v1268_v42  ;;  %v1766_v44 = vunpack.c.h.bf16 %v1268_v42 }
  0x6b   :  { %882 = vadd.xlane.f32.xlu1 %v845_v41 }
  0x6c   :  { %v862_v45 = vmul.f32 %v1764_v43, %v1764_v43  ;;  %v863_v46 = vmul.f32 %v1766_v44, %v1766_v44 }
  0x6d   :  { %1306 = vmatpush3.bf16.msra.mxu1 %v1425_v51  ;;  %v847_v51 = vmul.f32 %v1774_v49, %v1774_v49 }
  0x6e   :  { %1307 = vmatprep.subr.bf16.mxu1 %v1428_v52  ;;  %916 = vadd.xlane.f32.xlu0 %v862_v45  ;;  %v1269_v52 = vld [vmem:[#allocation8 + $0x60] sm:$0xff]  }
  0x6f   :  { %918 = vadd.xlane.f32.xlu1 %v863_v46 }
  0x71   :  { %1308 = vmatpush3.bf16.msra.mxu1 %v1429_v53  ;;  %v1261_v53 = vld [vmem:[#allocation8 + $0x20] sm:$0xff]  }
  0x72   :  { %1309 = vmatprep.subr.bf16.mxu1 %v1432_v54  ;;  %v1780_v54 = vunpack.c.l.bf16 %v1269_v52  ;;  %884 = vadd.xlane.f32.xlu0 %v846_v50 }
  0x73   :  { %886 = vadd.xlane.f32.xlu1 %v847_v51 }
  0x75   :  { %1310 = vmatpush3.bf16.msra.mxu1 %v1433_v55  ;;  %v1782_v55 = vunpack.c.h.bf16 %v1269_v52 }
  0x76   :  { %1339 = vmatprep.subr.bf16.mxu1 %v1438_v56  ;;  %v1784_v56 = vunpack.c.l.bf16 %v1261_v53 }
  0x78   :  { %679 = vmatmul.mubr.bf16.vlgmr.msra.gmra.mrb[4].mxu1 %v1124_v57  ;;  %v1786_v57 = vunpack.c.h.bf16 %v1261_v53 }
  0x79   :  { %1340 = vmatpush3.bf16.msra.mxu1 %v1441_v58  ;;  %758 = vmatprep.mubr.bf16.mxu1 %v1129_v61  ;;  %v864_v58 = vmul.f32 %v1780_v54, %v1780_v54  ;;  %v848_v61 = vmul.f32 %v1784_v56, %v1784_v56 }
  0x7a   :  { %1341 = vmatprep.subr.bf16.mxu1 %v1442_v59  ;;  %v865_v59 = vmul.f32 %v1782_v55, %v1782_v55 }
  0x7b   :  { %920 = vadd.xlane.f32.xlu0 %v864_v58 }
  0x7c   :  { %922 = vadd.xlane.f32.xlu1 %v865_v59 }
  0x7d   :  { %1342 = vmatpush3.bf16.msra.mxu1 %v1443_v62  ;;  %v849_v62 = vmul.f32 %v1786_v57, %v1786_v57 }
  0x7e   :  { %1343 = vmatprep.subr.bf16.mxu1 %v1444_v63  ;;  %v1796_v63 = vunpack.c.l.bf16 %v1270_v60 }
  0x7f   :  { %888 = vadd.xlane.f32.xlu0 %v848_v61 }
  0x80   :  { %890 = vadd.xlane.f32.xlu1 %v849_v62 }
  0x81   :  { %1344 = vmatpush3.bf16.msra.mxu1 %v1445_v0  ;;  %v1798_v0 = vunpack.c.h.bf16 %v1270_v60 }
  0x82   :  { %1345 = vmatprep.subr.bf16.mxu1 %v1446_v1  ;;  %v1262_v1 = vld [vmem:[#allocation8 + $0x28] sm:$0xff]  }
  0x85   :  { %1346 = vmatpush3.bf16.msra.mxu1 %v1447_v2  ;;  %v866_v2 = vmul.f32 %v1796_v63, %v1796_v63 }
  0x86   :  { %1347 = vmatprep.subr.bf16.mxu1 %v1448_v3  ;;  %v867_v3 = vmul.f32 %v1798_v0, %v1798_v0 }
  0x87   :  { %924 = vadd.xlane.f32.xlu0 %v866_v2 }
  0x88   :  { %926 = vadd.xlane.f32.xlu1 %v867_v3 }
  0x89   :  { %1348 = vmatpush3.bf16.msra.mxu1 %v1449_v4  ;;  %v1804_v4 = vunpack.c.l.bf16 %v1262_v1 }
  0x8a   :  { %1349 = vmatprep.subr.bf16.mxu1 %v1450_v5  ;;  %v1806_v5 = vunpack.c.h.bf16 %v1262_v1 }
  0x8d   :  { %1350 = vmatpush3.bf16.msra.mxu1 %v1451_v6  ;;  %v1271_v6 = vld [vmem:[#allocation8 + $0x70] sm:$0xff]  }
  0x8e   :  { %1351 = vmatprep.subr.bf16.mxu1 %v1452_v7  ;;  %v850_v7 = vmul.f32 %v1804_v4, %v1804_v4 }
  0x90   :  { %892 = vadd.xlane.f32.xlu0 %v850_v7 }
  0x91   :  { %1352 = vmatpush3.bf16.msra.mxu1 %v1453_v8  ;;  %v851_v8 = vmul.f32 %v1806_v5, %v1806_v5 }
  0x92   :  { %1353 = vmatprep.subr.bf16.mxu1 %v1454_v9  ;;  %v1812_v9 = vunpack.c.l.bf16 %v1271_v6 }
  0x93   :  { %894 = vadd.xlane.f32.xlu1 %v851_v8 }
  0x94   :  { %v868_v12 = vmul.f32 %v1812_v9, %v1812_v9 }
  0x95   :  { %1354 = vmatpush3.bf16.msra.mxu1 %v1455_v10  ;;  %v1814_v10 = vunpack.c.h.bf16 %v1271_v6 }
  0x96   :  { %928 = vadd.xlane.f32.xlu0 %v868_v12 }
  0x97   :  { %v869_v13 = vmul.f32 %v1814_v10, %v1814_v10 }
  0x98   :  { %759 = vmatmul.mubr.bf16.vlgmr.msra.gmra.mrb[8].mxu1 %v1128_v11  ;;  %v1263_v11 = vld [vmem:[#allocation8 + $0x30] sm:$0xff]  }
  0x99   :  { %v1820_v18 = vunpack.c.l.bf16 %v1263_v11  ;;  %v1822_v19 = vunpack.c.h.bf16 %v1263_v11  ;;  %930 = vadd.xlane.f32.xlu1 %v869_v13 }
  0x9b   :  { %v852_v20 = vmul.f32 %v1820_v18, %v1820_v18  ;;  %v853_v21 = vmul.f32 %v1822_v19, %v1822_v19 }
  0x9d   :  { %896 = vadd.xlane.f32.xlu0 %v852_v20  ;;  %898 = vadd.xlane.f32.xlu1 %v853_v21 }
  0xa1   :  { %934 = vadd.xlane.f32.xlu0 %v871_v27  ;;  %932 = vadd.xlane.f32.xlu1 %v870_v30 }
  0xa5   :  { %900 = vadd.xlane.f32.xlu1 %v854_v35 }
  0xdf   :  { %v905_v51 = vpop.xlane.xlu0 %904 }
  0xe0   :  { %v952_v53 = vmax.f32 %v905_v51, 1e-24  ;;  %v873_v58 = vpop.xlane.xlu1 %872 }
  0xe1   :  { %v936_v59 = vmax.f32 %v873_v58, 1e-24 }
  0xe2   :  { %1458 = vrsqrt.f32 %v952_v53 }
  0xe3   :  { %1460 = vrsqrt.f32 %v936_v59 }
  0xe4   :  { %v907_v60 = vpop.xlane.xlu0 %906 }
  0xe5   :  { %v953_v61 = vmax.f32 %v907_v60, 1e-24 }
  0xe7   :  { %v875_v62 = vpop.xlane.xlu1 %874  ;;  %1462 = vrsqrt.f32 %v953_v61 }
  0xe8   :  { %v937_v1 = vmax.f32 %v875_v62, 1e-24  ;;  %v909_v2 = vpop.xlane.xlu0 %908 }
  0xe9   :  { %v954_v3 = vmax.f32 %v909_v2, 1e-24 }
  0xea   :  { %1464 = vrsqrt.f32 %v937_v1 }
  0xeb   :  { %1466 = vrsqrt.f32 %v954_v3 }
  0xec   :  { %v911_v6 = vpop.xlane.xlu1 %910  ;;  %v1459_v13 = vpop.eup %1458 }
  0xed   :  { %v955_v7 = vmax.f32 %v911_v6, 1e-24  ;;  %v877_v12 = vpop.xlane.xlu0 %876  ;;  %v1461_v30 = vpop.eup %1460 }
  0xee   :  { %v938_v22 = vmax.f32 %v877_v12, 1e-24 }
  0xef   :  { %1468 = vrsqrt.f32 %v955_v7 }
  0xf0   :  { %v879_v27 = vpop.xlane.xlu1 %878  ;;  %1470 = vrsqrt.f32 %v938_v22 }
  0xf4   :  { %v915_v51 = vpop.xlane.xlu1 %914 }
  0xf5   :  { %v957_v58 = vmax.f32 %v915_v51, 1e-24 }
 0x12b   :  { %v1289_v36 = vpop.f32.mrb[0].mxu1 }
 0x12c   :  { %v1290_v37 = vpop.f32.mrb[1].mxu1 }
 0x12d   :  { %v1291_v40 = vadd.f32 %v1290_v37, %v1289_v36  ;;  %v1292_v41 = vpop.f32.mrb[2].mxu1  ;;  %v939_v36 = vmax.f32 %v879_v27, 1e-24 }
 0x12e   :  { %v1293_v42 = vpop.f32.mrb[3].mxu1  ;;  %v913_v41 = vpop.xlane.xlu0 %912 }
 0x12f   :  { %1472 = vrsqrt.f32 %v939_v36  ;;  %v1016_v42 = vmul.f32 %v1459_v13, %v1716_v14  ;;  %v883_v14 = vpop.xlane.xlu1 %882 }
 0x130   :  { %v941_v3 = vmax.f32 %v883_v14, 1e-24 }
 0x131   :  { %v1333_v45 = vpop.f32.mrb[0].mxu0 }
 0x132   :  { %v1334_v46 = vpop.f32.mrb[1].mxu0  ;;  %v881_v61 = vpop.xlane.xlu0 %880 }
 0x133   :  { %v1335_v47 = vadd.f32 %v1334_v46, %v1333_v45  ;;  %v1336_v50 = vpop.f32.mrb[2].mxu0  ;;  %v1463_v45 = vpop.eup %1462  ;;  %v940_v1 = vmax.f32 %v881_v61, 1e-24 }
 0x134   :  { %v1337_v52 = vpop.f32.mrb[3].mxu0  ;;  %v956_v50 = vmax.f32 %v913_v41, 1e-24  ;;  %v1465_v53 = vpop.eup %1464  ;;  %v1017_v59 = vmul.f32 %v1463_v45, %v1718_v15 }
 0x135   :  { %v1000_v52 = vmul.f32 %v1461_v30, %v1720_v16  ;;  %v1001_v60 = vmul.f32 %v1465_v53, %v1722_v17  ;;  %v1467_v62 = vpop.eup %1466  ;;  %v919_v13 = vpop.xlane.xlu1 %918 }
 0x136   :  { %1474 = vrsqrt.f32 %v956_v50  ;;  %v1018_v6 = vmul.f32 %v1467_v62, %v1732_v23  ;;  %v917_v12 = vpop.xlane.xlu0 %916  ;;  %v959_v22 = vmax.f32 %v919_v13, 1e-24  ;;  %v1864_v13 = vunpack.c.h.bf16 %v1836_v31 }
 0x137   :  { %1476 = vrsqrt.f32 %v957_v58  ;;  %v1032_v2 = vpack.c.bf16 %v1001_v60, %v1000_v52 }
 0x138   :  { %1478 = vrsqrt.f32 %v940_v1 }
 0x139   :  { %1480 = vrsqrt.f32 %v941_v3  ;;  %v887_v36 = vpop.xlane.xlu1 %886 }
 0x13a   :  { %v943_v41 = vmax.f32 %v887_v36, 1e-24 }
 0x13d   :  { %v923_v51 = vpop.xlane.xlu1 %922 }
 0x13e   :  { %v961_v53 = vmax.f32 %v923_v51, 1e-24 }
 0x14b   :  { %v1311_v8 = vpop.f32.mrb[4].mxu1 }
 0x14c   :  { %v1312_v11 = vpop.f32.mrb[5].mxu1 }
 0x14d   :  { %v1313_v20 = vadd.f32 %v1312_v11, %v1311_v8  ;;  %v1314_v21 = vpop.f32.mrb[6].mxu1 }
 0x14e   :  { %v1315_v35 = vpop.f32.mrb[7].mxu1  ;;  %v958_v21 = vmax.f32 %v917_v12, 1e-24 }
 0x14f   :  { %v681_v37 = vadd.f32 %v1313_v20, %v1291_v40  ;;  %v1040_v40 = vpack.c.bf16 %v1017_v59, %v1016_v42  ;;  %v885_v35 = vpop.xlane.xlu0 %884  ;;  %v891_v59 = vpop.xlane.xlu1 %890 }
 0x150   :  { %1482 = vrsqrt.f32 %v958_v21  ;;  %v945_v61 = vmax.f32 %v891_v59, 1e-24 }
 0x151   :  { %v1844_v46 = vadd.f32 %v1335_v47, %v681_v37  ;;  %v1469_v47 = vpop.eup %1468  ;;  %1361 = vmatprep.subr.bf16.mxu0 %v1040_v40  ;;  %1484 = vrsqrt.f32 %v959_v22  ;;  %v942_v37 = vmax.f32 %v885_v35, 1e-24 }
 0x152   :  { %1362 = vmatpush3.bf16.xpose.msra.mxu0 %v1032_v2  ;;  %v1019_v16 = vmul.f32 %v1469_v47, %v1734_v24  ;;  %v1471_v15 = vpop.eup %1470 }
 0x153   :  { %v1473_v17 = vpop.eup %1472  ;;  %v1002_v8 = vmul.f32 %v1471_v15, %v1740_v28  ;;  %1486 = vrsqrt.f32 %v942_v37  ;;  %v927_v15 = vpop.xlane.xlu1 %926 }
 0x154   :  { %v1041_v7 = vpack.c.bf16 %v1019_v16, %v1018_v6  ;;  %v1003_v11 = vmul.f32 %v1473_v17, %v1742_v29  ;;  %v1475_v20 = vpop.eup %1474  ;;  %1488 = vrsqrt.f32 %v943_v41 }
 0x155   :  { %v1477_v23 = vpop.eup %1476  ;;  %v1020_v30 = vmul.f32 %v1475_v20, %v1748_v33  ;;  %v921_v33 = vpop.xlane.xlu0 %920 }
 0x156   :  { %1363 = vmatprep.subr.bf16.mxu0 %v1041_v7  ;;  %v1033_v27 = vpack.c.bf16 %v1003_v11, %v1002_v8  ;;  %v1021_v24 = vmul.f32 %v1477_v23, %v1750_v34  ;;  %v1479_v28 = vpop.eup %1478  ;;  %v960_v52 = vmax.f32 %v921_v33, 1e-24  ;;  %v963_v11 = vmax.f32 %v927_v15, 1e-24 }
 0x157   :  { %v1481_v42 = vpop.eup %1480  ;;  %v1004_v45 = vmul.f32 %v1479_v28, %v1756_v38 }
 0x158   :  { %v1042_v29 = vpack.c.bf16 %v1021_v24, %v1020_v30  ;;  %v1005_v50 = vmul.f32 %v1481_v42, %v1758_v39  ;;  %1490 = vrsqrt.f32 %v960_v52  ;;  %v855_v24 = vmul.f32 %v1864_v13, %v1864_v13 }
 0x159   :  { %1492 = vrsqrt.f32 %v961_v53  ;;  %v889_v58 = vpop.xlane.xlu0 %888 }
 0x15a   :  { %1364 = vmatpush3.bf16.xpose.msra.mxu0 %v1033_v27  ;;  %v1034_v34 = vpack.c.bf16 %v1005_v50, %v1004_v45  ;;  %v1483_v60 = vpop.eup %1482  ;;  %v944_v40 = vmax.f32 %v889_v58, 1e-24 }
 0x15b   :  { %1365 = vmatprep.subr.bf16.mxu0 %v1042_v29  ;;  %v1485_v62 = vpop.eup %1484  ;;  %v1022_v38 = vmul.f32 %v1483_v60, %v1764_v43 }
 0x15c   :  { %1494 = vrsqrt.f32 %v944_v40  ;;  %v1023_v39 = vmul.f32 %v1485_v62, %v1766_v44 }
 0x15d   :  { %1496 = vrsqrt.f32 %v945_v61  ;;  %v925_v2 = vpop.xlane.xlu0 %924  ;;  %v1487_v47 = vpop.eup %1486 }
 0x15e   :  { %v962_v16 = vmax.f32 %v925_v2, 1e-24  ;;  %v1043_v7 = vpack.c.bf16 %v1023_v39, %v1022_v38  ;;  %v1489_v17 = vpop.eup %1488  ;;  %v1006_v12 = vmul.f32 %v1487_v47, %v1772_v48  ;;  %v895_v48 = vpop.xlane.xlu1 %894 }
 0x15f   :  { %v1007_v44 = vmul.f32 %v1489_v17, %v1774_v49  ;;  %v947_v30 = vmax.f32 %v895_v48, 1e-24 }
 0x160   :  { %1498 = vrsqrt.f32 %v962_v16 }
 0x161   :  { %1500 = vrsqrt.f32 %v963_v11  ;;  %v893_v20 = vpop.xlane.xlu0 %892  ;;  %v1035_v23 = vpack.c.bf16 %v1007_v44, %v1006_v12 }
 0x162   :  { %1366 = vmatpush3.bf16.xpose.msra.mxu0 %v1034_v34  ;;  %v1491_v21 = vpop.eup %1490  ;;  %v946_v27 = vmax.f32 %v893_v20, 1e-24  ;;  %v931_v37 = vpop.xlane.xlu1 %930 }
 0x163   :  { %1367 = vmatprep.subr.bf16.mxu0 %v1043_v7  ;;  %v1024_v31 = vmul.f32 %v1491_v21, %v1780_v54  ;;  %v965_v42 = vmax.f32 %v931_v37, 1e-24 }
 0x164   :  { %1502 = vrsqrt.f32 %v946_v27 }
 0x165   :  { %1504 = vrsqrt.f32 %v947_v30  ;;  %v929_v35 = vpop.xlane.xlu0 %928 }
 0x166   :  { %v964_v28 = vmax.f32 %v929_v35, 1e-24 }
 0x168   :  { %1506 = vrsqrt.f32 %v964_v28 }
 0x169   :  { %1508 = vrsqrt.f32 %v965_v42  ;;  %v897_v50 = vpop.xlane.xlu0 %896 }
 0x16a   :  { %1368 = vmatpush3.bf16.xpose.msra.mxu0 %v1035_v23  ;;  %v948_v51 = vmax.f32 %v897_v50, 1e-24 }
 0x16b   :  { %v1355_v1 = vpop.f32.mrb[8].mxu1 }
 0x16c   :  { %v1356_v14 = vpop.f32.mrb[9].mxu1  ;;  %1510 = vrsqrt.f32 %v948_v51 }
 0x16d   :  { %v1357_v3 = vadd.f32 %v1356_v14, %v1355_v1  ;;  %v1358_v6 = vpop.f32.mrb[10].mxu1 }
 0x16e   :  { %v1359_v8 = vpop.f32.mrb[11].mxu1 }
 0x16f   :  { %v1861_v43 = vadd.f32 %v1357_v3, %v1844_v46  ;;  %v1493_v46 = vpop.eup %1492 }
 0x170   :  { %v1025_v49 = vmul.f32 %v1493_v46, %v1782_v55  ;;  %v1495_v36 = vpop.eup %1494  ;;  %v899_v55 = vpop.xlane.xlu1 %898 }
 0x171   :  { %766 = vst [vmem:[#allocation9] sm:$0xff] %v1861_v43  ;;  %v767_v22 = vmul.f32 %v1861_v43, %v1861_v43  ;;  %v1497_v29 = vpop.eup %1496  ;;  %v1008_v45 = vmul.f32 %v1495_v36, %v1784_v56  ;;  %v949_v34 = vmax.f32 %v899_v55, 1e-24  ;;  %v935_v56 = vpop.xlane.xlu0 %934 }
 0x172   :  { %v1044_v41 = vpack.c.bf16 %v1025_v49, %v1024_v31  ;;  %v1009_v54 = vmul.f32 %v1497_v29, %v1786_v57  ;;  %v1499_v33 = vpop.eup %1498  ;;  %v967_v40 = vmax.f32 %v935_v56, 1e-24 }
 0x173   :  { %768 = vadd.xlane.f32.xlu0 %v767_v22  ;;  %v1501_v53 = vpop.eup %1500  ;;  %v1026_v58 = vmul.f32 %v1499_v33, %v1796_v63  ;;  %1512 = vrsqrt.f32 %v949_v34  ;;  %v770_v22 = vmul.f32 10.0, %v1861_v43 }
 0x174   :  { %1369 = vmatprep.subr.bf16.mxu0 %v1044_v41  ;;  %v1036_v52 = vpack.c.bf16 %v1009_v54, %v1008_v45  ;;  %v1027_v59 = vmul.f32 %v1501_v53, %v1798_v0  ;;  %v1503_v60 = vpop.eup %1502  ;;  %v933_v61 = vpop.xlane.xlu1 %932  ;;  %1514 = vrsqrt.f32 %v967_v40 }
 0x175   :  { %v1505_v62 = vpop.eup %1504  ;;  %v966_v38 = vmax.f32 %v933_v61, 1e-24  ;;  %v1010_v1 = vmul.f32 %v1503_v60, %v1804_v4 }
 0x176   :  { %1370 = vmatpush3.bf16.xpose.msra.mxu0 %v1036_v52  ;;  %v1045_v57 = vpack.c.bf16 %v1027_v59, %v1026_v58  ;;  %v1011_v39 = vmul.f32 %v1505_v62, %v1806_v5  ;;  %v1507_v63 = vpop.eup %1506 }
 0x177   :  { %902 = vadd.xlane.f32.xlu0 %v855_v24  ;;  %1516 = vrsqrt.f32 %v966_v38  ;;  %v1509_v2 = vpop.eup %1508  ;;  %v1028_v0 = vmul.f32 %v1507_v63, %v1812_v9 }
 0x178   :  { %1371 = vmatprep.subr.bf16.mxu0 %v1045_v57  ;;  %v1037_v14 = vpack.c.bf16 %v1011_v39, %v1010_v1  ;;  %v1029_v47 = vmul.f32 %v1509_v2, %v1814_v10  ;;  %v1511_v3 = vpop.eup %1510  ;;  %v901_v12 = vpop.xlane.xlu1 %900 }
 0x179   :  { %v1012_v15 = vmul.f32 %v1511_v3, %v1820_v18  ;;  %v950_v10 = vmax.f32 %v901_v12, 1e-24 }
 0x17a   :  { %v1046_v6 = vpack.c.bf16 %v1029_v47, %v1028_v0 }
 0x17b   :  { %1518 = vrsqrt.f32 %v950_v10 }
 0x17d   :  { %v1513_v16 = vpop.eup %1512 }
 0x17e   :  { %1372 = vmatpush3.bf16.xpose.msra.mxu0 %v1037_v14  ;;  %v1013_v4 = vmul.f32 %v1513_v16, %v1822_v19  ;;  %v1515_v7 = vpop.eup %1514 }
 0x17f   :  { %1373 = vmatprep.subr.bf16.mxu0 %v1046_v6  ;;  %v1031_v8 = vmul.f32 %v1515_v7, %v1828_v25 }
 0x180   :  { %v1038_v17 = vpack.c.bf16 %v1013_v4, %v1012_v15 }
 0x181   :  { %v1517_v5 = vpop.eup %1516 }
 0x182   :  { %v1030_v11 = vmul.f32 %v1517_v5, %v1830_v26 }
 0x184   :  { %v1047_v9 = vpack.c.bf16 %v1031_v8, %v1030_v11 }
 0x185   :  { %v1519_v19 = vpop.eup %1518 }
 0x186   :  { %1374 = vmatpush3.bf16.xpose.msra.mxu0 %v1038_v17  ;;  %v1014_v23 = vmul.f32 %v1519_v19, %v1839_v32 }
 0x187   :  { %1375 = vmatprep.subr.bf16.mxu0 %v1047_v9 }
 0x200   :  { %v769_v44 = vpop.xlane.xlu0 %768 }
 0x201   :  { %v771_v20 = vmax.f32 %v769_v44, 1e-24 }
 0x203   :  { %1520 = vrsqrt.f32 %v771_v20 }
 0x204   :  { %v903_v18 = vpop.xlane.xlu0 %902 }
 0x205   :  { %v951_v21 = vmax.f32 %v903_v18, 1e-24 }
 0x207   :  { %1522 = vrsqrt.f32 %v951_v21 }
 0x20d   :  { %v1521_v27 = vpop.eup %1520 }
 0x20e   :  { %v773_v48 = vmul.f32 %v1521_v27, %v770_v22 }
 0x210   :  { %v774_v25 = vpack.c.bf16 %v773_v48, %v773_v48 }
 0x211   :  { %v1523_v26 = vpop.eup %1522 }
 0x212   :  { %775 = vst [vmem:[#allocation2] sm:$0xf] %v774_v25  ;;  %v1015_v46 = vmul.f32 %v1523_v26, %v1864_v13 }
 0x214   :  { %v1039_v30 = vpack.c.bf16 %v1015_v46, %v1014_v23 }
 0x216   :  { %1376 = vmatpush3.bf16.xpose.msra.mxu0 %v1039_v30 }
 0x219   :  { %v1048_v31 = vld [vmem:[#allocation2] sm:$0xf] }
 0x21a   :  { %1377 = vmatprep.mubr.bf16.mxu0 %v1048_v31 }
 0x21d   :  { %1378 = vmatmul.mubr.bf16.vlgmr.msra.gmra.mrb[4].mxu0 %v1048_v31 }
 0x21e   :  { %1601 = shalt.err (!%p1598_p0)
}
 0x21f   :  { %s1602_s29 = scalar_lea.hbm %s1916_s3, 128 }
 0x220   :  { %p1603_p1 = scmp.ne.s32.totalorder %s1916_s3, %s1602_s29  ;;  %p1606_p2 = scmp.lt.u32.totalorder %s1602_s29, %s1916_s3 }
 0x222   :  { %p1608_p3 = pnand %p1606_p2, %p1603_p1 }
 0x224   :  { %1611 = shalt.err (!%p1608_p3)
}
 0x225   :  { %1101 = dma.vmem_to_hbm [thread:$0]  %s1099_s25, 128, %s1916_s3, [#allocation5]  }
 0x226   :  { %s1648_s10 = smov [#allocation10]  }
 0x227   :  { %s1108_s11 = sshll.u32 %s1648_s10, 4  ;;  %s1109_s11 = int_to_ptr.vmem [resolvable:$true] %s1108_s11 }
 0x228   :  { %s1612_s12 = scalar_lea.vmem %s1109_s11, 256  ;;  %p1617_p5 = scmp.lt.s32.totalorder %s1109_s11, %s1109_s11 }
 0x229   :  { %p1613_p4 = scmp.ne.s32.totalorder %s1109_s11, %s1612_s12  ;;  %p1618_p6 = scmp.lt.s32.totalorder %s1612_s12, %s1612_s12 }
 0x22b   :  { %p1619_p7 = por %p1618_p6, %p1617_p5 }
 0x22d   :  { %p1620_p8 = pnand %p1619_p7, %p1613_p4 }
 0x2f0   :  { %v1083_v32 = vpop.f32.mrb[4].mxu0 }
 0x2f1   :  { %1090 = vst [vmem:[#allocation10] sm:$0xff] %v1083_v32  ;;  %v1085_v43 = vpop.f32.mrb[5].mxu0 }
 0x2f2   :  { %1091 = vst [vmem:[#allocation10 + $0x8] sm:$0xff] %v1085_v43  ;;  %v1087_v13 = vpop.f32.mrb[6].mxu0 }
 0x2f3   :  { %v1088_v24 = vpop.f32.mrb[7].mxu0 }
 0x2f4   :  { %1623 = shalt.err (!%p1620_p8)
}
 0x2f5   :  { %s1624_s3 = scalar_lea.hbm %s1917_s4, 256 }
 0x2f6   :  { %p1625_p9 = scmp.ne.s32.totalorder %s1917_s4, %s1624_s3  ;;  %p1628_p10 = scmp.lt.u32.totalorder %s1624_s3, %s1917_s4 }
 0x2f8   :  { %p1630_p11 = pnand %p1628_p10, %p1625_p9 }
 0x2fa   :  { %1633 = shalt.err (!%p1630_p11)
}
 0x2fb   :  { %1111 = dma.vmem_to_hbm [thread:$0]  %s1109_s11, 256, %s1917_s4, [#allocation11]  }
 0x2fc   :  { %1638 = dma.done.wait [#allocation5], 128  }
 0x2fd   :  { %1639 = vsyncadd [#allocation5], 4294967168 }
 0x2fe   :  { %1640 = dma.done.wait [#allocation11], 256  }
 0x2ff   :  { %1641 = vsyncadd [#allocation11], 4294967040 }
 0x300   :  { %1118 = vsyncpa [#allocation4], 1 }
 0x301   :  { %1119 = vsyncpa [#allocation7], 1 }
 0x302   :  { %1120 = vsyncpa [#allocation5], 1 }
 0x303   :  { %1121 = vsyncpa [#allocation11], 1 }

</bundles_post_ra>
